<compile_context>
chip_gen: v6e
topology: v6e:2x2x1
jax: 0.10.0
libtpu: 0.0.40
codegen_flags: <defaults>
</compile_context>

<pallas_src>
import jax
import jax.numpy as jnp
import numpy as np
from jax import lax
from jax.experimental import pallas as pl
from jax.experimental.pallas import tpu as pltpu

EPS = 1e-5


def _make_kernel(R, Cin, Cout, projection):
    """R = N*L flattened rows; activations live as (R, C), channels on lanes."""
    inv_R = 1.0 / R

    def bn_relu(y, g_ref, b_ref, relu=True):
        # One-pass training-mode BN folded to scale/shift: var = E[y^2] - mean^2.
        mean = jnp.sum(y, axis=0, keepdims=True) * inv_R            # (1, C)
        msq = jnp.sum(y * y, axis=0, keepdims=True) * inv_R         # (1, C)
        var = msq - mean * mean                                     # biased var
        scale = g_ref[...] * lax.rsqrt(var + EPS)
        shift = b_ref[...] - mean * scale
        out = y * scale + shift
        return jnp.maximum(out, 0.0) if relu else out

    def im2col(src, has_prev, has_next):
        # length-3, stride-1, zero-pad-1 conv taps via sublane roll + edge masks.
        prev = pltpu.roll(src, shift=1, axis=0) * has_prev           # x[l-1], 0 at l==0
        nxt = pltpu.roll(src, shift=R - 1, axis=0) * has_next        # x[l+1], 0 at l==L-1
        return jnp.concatenate([prev, src, nxt], axis=1)             # (R, 3*C)

    def kernel(x_ref, hp_ref, hn_ref, wA_ref, g1_ref, be1_ref,
               w2_ref, g2_ref, be2_ref, *rest):
        if projection:
            gs_ref, bes_ref, g3_ref, be3_ref, o_ref = rest
        else:
            g3_ref, be3_ref, o_ref = rest

        x = x_ref[...].astype(jnp.float32)
        has_prev = hp_ref[...]
        has_next = hn_ref[...]

        # conv1 (and, if projecting, the fused 1x1 shortcut) as one wide matmul.
        cols = im2col(x, has_prev, has_next)                         # (R, 3*Cin)
        y = jnp.dot(cols, wA_ref[...], preferred_element_type=jnp.float32)
        h = bn_relu(y[:, :Cout], g1_ref, be1_ref)

        # conv2 as one matmul.
        cols2 = im2col(h, has_prev, has_next)                        # (R, 3*Cout)
        h2 = jnp.dot(cols2, w2_ref[...], preferred_element_type=jnp.float32)
        h2 = bn_relu(h2, g2_ref, be2_ref)

        # shortcut branch.
        if projection:
            sc = bn_relu(y[:, Cout:], gs_ref, bes_ref, relu=False)
        else:
            sc = x

        f = bn_relu(h2 + sc, g3_ref, be3_ref)
        o_ref[...] = f.astype(o_ref.dtype)

    return kernel


def conv_block_forward(x_ncl, params):
    N, Cin, L = x_ncl.shape
    Cout = params["w1"].shape[-1]
    projection = Cin != Cout
    R = N * L

    # layout plumbing in the wrapper: (N, Cin, L) -> flat channels-last (N*L, Cin)
    xf = jnp.transpose(x_ncl, (0, 2, 1)).reshape(R, Cin).astype(jnp.float32)

    # segment-edge masks for the circular sublane roll (zero the wrapped rows)
    li = jnp.arange(R, dtype=jnp.int32) % L
    has_prev = (li != 0).astype(jnp.float32)[:, None]        # (R, 1)
    has_next = (li != L - 1).astype(jnp.float32)[:, None]    # (R, 1)

    # pre-stacked im2col weights; conv biases are dropped (cancelled by training-mode BN)
    w1s = params["w1"].reshape(3 * Cin, Cout)
    if projection:
        ws_pad = jnp.zeros((3 * Cin, Cout), jnp.float32).at[Cin:2 * Cin].set(params["ws"])
        wA = jnp.concatenate([w1s, ws_pad], axis=1)          # (3*Cin, 2*Cout)
    else:
        wA = w1s                                             # (3*Cin, Cout)
    w2s = params["w2"].reshape(3 * Cout, Cout)

    args = [xf, has_prev, has_next, wA,
            params["g1"], params["be1"], w2s, params["g2"], params["be2"]]
    if projection:
        args += [params["gs"], params["bes"]]
    args += [params["g3"], params["be3"]]

    kernel = _make_kernel(R, Cin, Cout, projection)
    out = pl.pallas_call(
        kernel,
        out_shape=jax.ShapeDtypeStruct((R, Cout), jnp.float32),
        in_specs=[pl.BlockSpec(memory_space=pltpu.MemorySpace.VMEM)] * len(args),
        out_specs=pl.BlockSpec(memory_space=pltpu.MemorySpace.VMEM),
        compiler_params=pltpu.CompilerParams(vmem_limit_bytes=32 * 1024 * 1024),
    )(*args)
    return jnp.transpose(out.reshape(N, L, Cout), (0, 2, 1))  # back to PyTorch NCL


# ----- pure-JAX reference (independent conv via lax.conv_general_dilated, WITH biases) -----
def _bn_ref(y, g, b):
    mean = jnp.mean(y, axis=(0, 1), keepdims=True)
    var = jnp.mean(jnp.square(y - mean), axis=(0, 1), keepdims=True)
    return (y - mean) * lax.rsqrt(var + EPS) * g[None] + b[None]


def conv_block_reference(x_ncl, params):
    x = jnp.transpose(x_ncl, (0, 2, 1))  # NLC
    dn = ("NWC", "WIO", "NWC")

    def conv(a, w, b):
        return lax.conv_general_dilated(a, w, (1,), "SAME",
                                        dimension_numbers=dn) + b[None]

    Cin = x.shape[-1]
    Cout = params["w1"].shape[-1]
    h = conv(x, params["w1"], params["b1"])
    h = jax.nn.relu(_bn_ref(h, params["g1"], params["be1"]))
    h = conv(h, params["w2"], params["b2"])
    h = jax.nn.relu(_bn_ref(h, params["g2"], params["be2"]))
    if Cin != Cout:
        sc = conv(x, params["ws"][None], params["bs"])
        sc = _bn_ref(sc, params["gs"], params["bes"])
    else:
        sc = x
    f = jax.nn.relu(_bn_ref(h + sc, params["g3"], params["be3"]))
    return jnp.transpose(f, (0, 2, 1))


def init_params(key, Cin, Cout):
    ks = jax.random.split(key, 6)
    f32 = jnp.float32
    p = {
        "w1": 0.2 * jax.random.normal(ks[0], (3, Cin, Cout), f32),
        "b1": 0.1 * jax.random.normal(ks[1], (1, Cout), f32),
        "g1": jnp.ones((1, Cout), f32), "be1": jnp.zeros((1, Cout), f32),
        "w2": 0.2 * jax.random.normal(ks[2], (3, Cout, Cout), f32),
        "b2": 0.1 * jax.random.normal(ks[3], (1, Cout), f32),
        "g2": jnp.ones((1, Cout), f32), "be2": jnp.zeros((1, Cout), f32),
        "g3": jnp.ones((1, Cout), f32), "be3": jnp.zeros((1, Cout), f32),
    }
    if Cin != Cout:
        p["ws"] = 0.2 * jax.random.normal(ks[4], (Cin, Cout), f32)
        p["bs"] = 0.1 * jax.random.normal(ks[5], (1, Cout), f32)
        p["gs"] = jnp.ones((1, Cout), f32)
        p["bes"] = jnp.zeros((1, Cout), f32)
    return p


def _run_case(key, N, Cin, Cout, L):
    kx, kp = jax.random.split(key)
    x = jax.random.normal(kx, (N, Cin, L), jnp.float32)   # PyTorch Conv1d NCL input
    params = init_params(kp, Cin, Cout)
    out = jax.block_until_ready(conv_block_forward(x, params))
    ref = jax.block_until_ready(conv_block_reference(x, params))
    assert out.shape == (N, Cout, L)
    np.testing.assert_allclose(np.asarray(out), np.asarray(ref), atol=1e-4, rtol=1e-4)


if __name__ == "__main__":
    key = jax.random.PRNGKey(0)
    k1, k2 = jax.random.split(key)
    # projection path (in_channels != out_channels); 128 output channels -> lane-dense stores
    _run_case(k1, N=2, Cin=64, Cout=128, L=64)
    # identity-shortcut path (in_channels == out_channels)
    _run_case(k2, N=2, Cin=128, Cout=128, L=32)
    print("KERNEL_OK")
</pallas_src>

<mosaic_0001>
module attributes {stable_mosaic.version = 11 : i64} {
  func.func @kernel(%arg0: memref<128x64xf32, #tpu.memory_space<vmem>>, %arg1: memref<128x1xf32, #tpu.memory_space<vmem>>, %arg2: memref<128x1xf32, #tpu.memory_space<vmem>>, %arg3: memref<192x256xf32, #tpu.memory_space<vmem>>, %arg4: memref<1x128xf32, #tpu.memory_space<vmem>>, %arg5: memref<1x128xf32, #tpu.memory_space<vmem>>, %arg6: memref<384x128xf32, #tpu.memory_space<vmem>>, %arg7: memref<1x128xf32, #tpu.memory_space<vmem>>, %arg8: memref<1x128xf32, #tpu.memory_space<vmem>>, %arg9: memref<1x128xf32, #tpu.memory_space<vmem>>, %arg10: memref<1x128xf32, #tpu.memory_space<vmem>>, %arg11: memref<1x128xf32, #tpu.memory_space<vmem>>, %arg12: memref<1x128xf32, #tpu.memory_space<vmem>>, %arg13: memref<128x128xf32, #tpu.memory_space<vmem>>) attributes {dimension_semantics = [], scalar_prefetch = 0 : i64, scratch_operands = 0 : i64, tpu.core_type = #tpu.core_type<tc>} {
    %c0 = arith.constant 0 : index
    %c0_0 = arith.constant 0 : index
    %0 = vector.load %arg0[%c0, %c0_0] : memref<128x64xf32, #tpu.memory_space<vmem>>, vector<128x64xf32>
    %c0_1 = arith.constant 0 : index
    %c0_2 = arith.constant 0 : index
    %1 = vector.load %arg1[%c0_1, %c0_2] : memref<128x1xf32, #tpu.memory_space<vmem>>, vector<128x1xf32>
    %c0_3 = arith.constant 0 : index
    %c0_4 = arith.constant 0 : index
    %2 = vector.load %arg2[%c0_3, %c0_4] : memref<128x1xf32, #tpu.memory_space<vmem>>, vector<128x1xf32>
    %c1_i32 = arith.constant 1 : i32
    %3 = tpu.dynamic_rotate %0 by %c1_i32 dim 0 : vector<128x64xf32>, i32 -> vector<128x64xf32>
    %4 = vector.broadcast %1 : vector<128x1xf32> to vector<128x64xf32>
    %5 = arith.mulf %3, %4 : vector<128x64xf32>
    %c127_i32 = arith.constant 127 : i32
    %6 = tpu.dynamic_rotate %0 by %c127_i32 dim 0 : vector<128x64xf32>, i32 -> vector<128x64xf32>
    %7 = vector.broadcast %2 : vector<128x1xf32> to vector<128x64xf32>
    %8 = arith.mulf %6, %7 : vector<128x64xf32>
    %9 = tpu.concatenate %5, %0, %8 in 1 : vector<128x64xf32>, vector<128x64xf32>, vector<128x64xf32> -> vector<128x192xf32>
    %c0_5 = arith.constant 0 : index
    %c0_6 = arith.constant 0 : index
    %10 = vector.load %arg3[%c0_5, %c0_6] : memref<192x256xf32, #tpu.memory_space<vmem>>, vector<192x256xf32>
    %cst = arith.constant dense<0.000000e+00> : vector<128x256xf32>
    %11 = tpu.matmul %9, %10, %cst {dimension_numbers = #tpu.dot_dimension_numbers<[1], [0], [0], [1], [0, 0, 1, 1], [], []>} : vector<128x192xf32>, vector<192x256xf32>, vector<128x256xf32> -> vector<128x256xf32>
    %12 = vector.extract_strided_slice %11 {offsets = [0, 0], sizes = [128, 128], strides = [1, 1]} : vector<128x256xf32> to vector<128x128xf32>
    %cst_7 = arith.constant dense<0.000000e+00> : vector<128xf32>
    %13 = vector.multi_reduction <add>, %12, %cst_7 [0] : vector<128x128xf32> to vector<128xf32>
    %14 = vector.shape_cast %13 : vector<128xf32> to vector<1x128xf32>
    %cst_8 = arith.constant 7.812500e-03 : f32
    %15 = vector.broadcast %cst_8 : f32 to vector<1x128xf32>
    %16 = arith.mulf %14, %15 : vector<1x128xf32>
    %17 = arith.mulf %12, %12 : vector<128x128xf32>
    %cst_9 = arith.constant dense<0.000000e+00> : vector<128xf32>
    %18 = vector.multi_reduction <add>, %17, %cst_9 [0] : vector<128x128xf32> to vector<128xf32>
    %19 = vector.shape_cast %18 : vector<128xf32> to vector<1x128xf32>
    %cst_10 = arith.constant 7.812500e-03 : f32
    %20 = vector.broadcast %cst_10 : f32 to vector<1x128xf32>
    %21 = arith.mulf %19, %20 : vector<1x128xf32>
    %22 = arith.mulf %16, %16 : vector<1x128xf32>
    %23 = arith.subf %21, %22 : vector<1x128xf32>
    %c0_11 = arith.constant 0 : index
    %c0_12 = arith.constant 0 : index
    %24 = vector.load %arg4[%c0_11, %c0_12] : memref<1x128xf32, #tpu.memory_space<vmem>>, vector<1x128xf32>
    %cst_13 = arith.constant 9.99999974E-6 : f32
    %25 = vector.broadcast %cst_13 : f32 to vector<1x128xf32>
    %26 = arith.addf %23, %25 : vector<1x128xf32>
    %27 = math.rsqrt %26 : vector<1x128xf32>
    %28 = arith.mulf %24, %27 : vector<1x128xf32>
    %c0_14 = arith.constant 0 : index
    %c0_15 = arith.constant 0 : index
    %29 = vector.load %arg5[%c0_14, %c0_15] : memref<1x128xf32, #tpu.memory_space<vmem>>, vector<1x128xf32>
    %30 = arith.mulf %16, %28 : vector<1x128xf32>
    %31 = arith.subf %29, %30 : vector<1x128xf32>
    %32 = vector.broadcast %28 : vector<1x128xf32> to vector<128x128xf32>
    %33 = arith.mulf %12, %32 : vector<128x128xf32>
    %34 = vector.broadcast %31 : vector<1x128xf32> to vector<128x128xf32>
    %35 = arith.addf %33, %34 : vector<128x128xf32>
    %cst_16 = arith.constant 0.000000e+00 : f32
    %36 = vector.broadcast %cst_16 : f32 to vector<128x128xf32>
    %37 = arith.maximumf %35, %36 : vector<128x128xf32>
    %c1_i32_17 = arith.constant 1 : i32
    %38 = tpu.dynamic_rotate %37 by %c1_i32_17 dim 0 : vector<128x128xf32>, i32 -> vector<128x128xf32>
    %39 = vector.broadcast %1 : vector<128x1xf32> to vector<128x128xf32>
    %40 = arith.mulf %38, %39 : vector<128x128xf32>
    %c127_i32_18 = arith.constant 127 : i32
    %41 = tpu.dynamic_rotate %37 by %c127_i32_18 dim 0 : vector<128x128xf32>, i32 -> vector<128x128xf32>
    %42 = vector.broadcast %2 : vector<128x1xf32> to vector<128x128xf32>
    %43 = arith.mulf %41, %42 : vector<128x128xf32>
    %44 = tpu.concatenate %40, %37, %43 in 1 : vector<128x128xf32>, vector<128x128xf32>, vector<128x128xf32> -> vector<128x384xf32>
    %c0_19 = arith.constant 0 : index
    %c0_20 = arith.constant 0 : index
    %45 = vector.load %arg6[%c0_19, %c0_20] : memref<384x128xf32, #tpu.memory_space<vmem>>, vector<384x128xf32>
    %cst_21 = arith.constant dense<0.000000e+00> : vector<128x128xf32>
    %46 = tpu.matmul %44, %45, %cst_21 {dimension_numbers = #tpu.dot_dimension_numbers<[1], [0], [0], [1], [0, 0, 1, 1], [], []>} : vector<128x384xf32>, vector<384x128xf32>, vector<128x128xf32> -> vector<128x128xf32>
    %cst_22 = arith.constant dense<0.000000e+00> : vector<128xf32>
    %47 = vector.multi_reduction <add>, %46, %cst_22 [0] : vector<128x128xf32> to vector<128xf32>
    %48 = vector.shape_cast %47 : vector<128xf32> to vector<1x128xf32>
    %cst_23 = arith.constant 7.812500e-03 : f32
    %49 = vector.broadcast %cst_23 : f32 to vector<1x128xf32>
    %50 = arith.mulf %48, %49 : vector<1x128xf32>
    %51 = arith.mulf %46, %46 : vector<128x128xf32>
    %cst_24 = arith.constant dense<0.000000e+00> : vector<128xf32>
    %52 = vector.multi_reduction <add>, %51, %cst_24 [0] : vector<128x128xf32> to vector<128xf32>
    %53 = vector.shape_cast %52 : vector<128xf32> to vector<1x128xf32>
    %cst_25 = arith.constant 7.812500e-03 : f32
    %54 = vector.broadcast %cst_25 : f32 to vector<1x128xf32>
    %55 = arith.mulf %53, %54 : vector<1x128xf32>
    %56 = arith.mulf %50, %50 : vector<1x128xf32>
    %57 = arith.subf %55, %56 : vector<1x128xf32>
    %c0_26 = arith.constant 0 : index
    %c0_27 = arith.constant 0 : index
    %58 = vector.load %arg7[%c0_26, %c0_27] : memref<1x128xf32, #tpu.memory_space<vmem>>, vector<1x128xf32>
    %cst_28 = arith.constant 9.99999974E-6 : f32
    %59 = vector.broadcast %cst_28 : f32 to vector<1x128xf32>
    %60 = arith.addf %57, %59 : vector<1x128xf32>
    %61 = math.rsqrt %60 : vector<1x128xf32>
    %62 = arith.mulf %58, %61 : vector<1x128xf32>
    %c0_29 = arith.constant 0 : index
    %c0_30 = arith.constant 0 : index
    %63 = vector.load %arg8[%c0_29, %c0_30] : memref<1x128xf32, #tpu.memory_space<vmem>>, vector<1x128xf32>
    %64 = arith.mulf %50, %62 : vector<1x128xf32>
    %65 = arith.subf %63, %64 : vector<1x128xf32>
    %66 = vector.broadcast %62 : vector<1x128xf32> to vector<128x128xf32>
    %67 = arith.mulf %46, %66 : vector<128x128xf32>
    %68 = vector.broadcast %65 : vector<1x128xf32> to vector<128x128xf32>
    %69 = arith.addf %67, %68 : vector<128x128xf32>
    %cst_31 = arith.constant 0.000000e+00 : f32
    %70 = vector.broadcast %cst_31 : f32 to vector<128x128xf32>
    %71 = arith.maximumf %69, %70 : vector<128x128xf32>
    %72 = vector.extract_strided_slice %11 {offsets = [0, 128], sizes = [128, 128], strides = [1, 1]} : vector<128x256xf32> to vector<128x128xf32>
    %cst_32 = arith.constant dense<0.000000e+00> : vector<128xf32>
    %73 = vector.multi_reduction <add>, %72, %cst_32 [0] : vector<128x128xf32> to vector<128xf32>
    %74 = vector.shape_cast %73 : vector<128xf32> to vector<1x128xf32>
    %cst_33 = arith.constant 7.812500e-03 : f32
    %75 = vector.broadcast %cst_33 : f32 to vector<1x128xf32>
    %76 = arith.mulf %74, %75 : vector<1x128xf32>
    %77 = arith.mulf %72, %72 : vector<128x128xf32>
    %cst_34 = arith.constant dense<0.000000e+00> : vector<128xf32>
    %78 = vector.multi_reduction <add>, %77, %cst_34 [0] : vector<128x128xf32> to vector<128xf32>
    %79 = vector.shape_cast %78 : vector<128xf32> to vector<1x128xf32>
    %cst_35 = arith.constant 7.812500e-03 : f32
    %80 = vector.broadcast %cst_35 : f32 to vector<1x128xf32>
    %81 = arith.mulf %79, %80 : vector<1x128xf32>
    %82 = arith.mulf %76, %76 : vector<1x128xf32>
    %83 = arith.subf %81, %82 : vector<1x128xf32>
    %c0_36 = arith.constant 0 : index
    %c0_37 = arith.constant 0 : index
    %84 = vector.load %arg9[%c0_36, %c0_37] : memref<1x128xf32, #tpu.memory_space<vmem>>, vector<1x128xf32>
    %cst_38 = arith.constant 9.99999974E-6 : f32
    %85 = vector.broadcast %cst_38 : f32 to vector<1x128xf32>
    %86 = arith.addf %83, %85 : vector<1x128xf32>
    %87 = math.rsqrt %86 : vector<1x128xf32>
    %88 = arith.mulf %84, %87 : vector<1x128xf32>
    %c0_39 = arith.constant 0 : index
    %c0_40 = arith.constant 0 : index
    %89 = vector.load %arg10[%c0_39, %c0_40] : memref<1x128xf32, #tpu.memory_space<vmem>>, vector<1x128xf32>
    %90 = arith.mulf %76, %88 : vector<1x128xf32>
    %91 = arith.subf %89, %90 : vector<1x128xf32>
    %92 = vector.broadcast %88 : vector<1x128xf32> to vector<128x128xf32>
    %93 = arith.mulf %72, %92 : vector<128x128xf32>
    %94 = vector.broadcast %91 : vector<1x128xf32> to vector<128x128xf32>
    %95 = arith.addf %93, %94 : vector<128x128xf32>
    %96 = arith.addf %71, %95 : vector<128x128xf32>
    %cst_41 = arith.constant dense<0.000000e+00> : vector<128xf32>
    %97 = vector.multi_reduction <add>, %96, %cst_41 [0] : vector<128x128xf32> to vector<128xf32>
    %98 = vector.shape_cast %97 : vector<128xf32> to vector<1x128xf32>
    %cst_42 = arith.constant 7.812500e-03 : f32
    %99 = vector.broadcast %cst_42 : f32 to vector<1x128xf32>
    %100 = arith.mulf %98, %99 : vector<1x128xf32>
    %101 = arith.mulf %96, %96 : vector<128x128xf32>
    %cst_43 = arith.constant dense<0.000000e+00> : vector<128xf32>
    %102 = vector.multi_reduction <add>, %101, %cst_43 [0] : vector<128x128xf32> to vector<128xf32>
    %103 = vector.shape_cast %102 : vector<128xf32> to vector<1x128xf32>
    %cst_44 = arith.constant 7.812500e-03 : f32
    %104 = vector.broadcast %cst_44 : f32 to vector<1x128xf32>
    %105 = arith.mulf %103, %104 : vector<1x128xf32>
    %106 = arith.mulf %100, %100 : vector<1x128xf32>
    %107 = arith.subf %105, %106 : vector<1x128xf32>
    %c0_45 = arith.constant 0 : index
    %c0_46 = arith.constant 0 : index
    %108 = vector.load %arg11[%c0_45, %c0_46] : memref<1x128xf32, #tpu.memory_space<vmem>>, vector<1x128xf32>
    %cst_47 = arith.constant 9.99999974E-6 : f32
    %109 = vector.broadcast %cst_47 : f32 to vector<1x128xf32>
    %110 = arith.addf %107, %109 : vector<1x128xf32>
    %111 = math.rsqrt %110 : vector<1x128xf32>
    %112 = arith.mulf %108, %111 : vector<1x128xf32>
    %c0_48 = arith.constant 0 : index
    %c0_49 = arith.constant 0 : index
    %113 = vector.load %arg12[%c0_48, %c0_49] : memref<1x128xf32, #tpu.memory_space<vmem>>, vector<1x128xf32>
    %114 = arith.mulf %100, %112 : vector<1x128xf32>
    %115 = arith.subf %113, %114 : vector<1x128xf32>
    %116 = vector.broadcast %112 : vector<1x128xf32> to vector<128x128xf32>
    %117 = arith.mulf %96, %116 : vector<128x128xf32>
    %118 = vector.broadcast %115 : vector<1x128xf32> to vector<128x128xf32>
    %119 = arith.addf %117, %118 : vector<128x128xf32>
    %cst_50 = arith.constant 0.000000e+00 : f32
    %120 = vector.broadcast %cst_50 : f32 to vector<128x128xf32>
    %121 = arith.maximumf %119, %120 : vector<128x128xf32>
    %c0_51 = arith.constant 0 : index
    %c0_52 = arith.constant 0 : index
    %122 = vector.load %arg13[%c0_51, %c0_52] : memref<128x128xf32, #tpu.memory_space<vmem>>, vector<128x128xf32>
    tpu.vector_store %arg13[%c0_51, %c0_52], %121 {strides = array<i32>} : memref<128x128xf32, #tpu.memory_space<vmem>>, vector<128x128xf32>,
    return
  }
}

</mosaic_0001>

<bundles_post_ra>
// kernel: tpu_custom_call.1
= control target key start
LH: loop header
LB: loop body
LE: loop exit
PB: predicated region body
PF: predicated region fallthrough
CT: control target
= control target key end

     0   :  { %18 = vsyncpa [#allocation3], 0  ;;  %s3495_s0 = inlined_call_operand.vmem [shape: f32[128,64], index: 0, kind: input, shape index: {}]   ;;  %s3496_s1 = inlined_call_operand.vmem [shape: f32[128,1], index: 1, kind: input, shape index: {}]   ;;  %s3497_s2 = inlined_call_operand.vmem [shape: f32[128,1], index: 2, kind: input, shape index: {}]   ;;  %s3498_s3 = inlined_call_operand.vmem [shape: f32[192,256], index: 3, kind: input, shape index: {}]   ;;  %s3499_s4 = inlined_call_operand.vmem [shape: f32[1,128], index: 4, kind: input, shape index: {}]   ;;  %s3500_s5 = inlined_call_operand.vmem [shape: f32[1,128], index: 5, kind: input, shape index: {}]   ;;  %s3501_s6 = inlined_call_operand.hbm [shape: f32[384,128], index: 6, kind: input, shape index: {}]   ;;  %s3502_s7 = inlined_call_operand.vmem [shape: f32[1,128], index: 7, kind: input, shape index: {}]   ;;  %s3503_s8 = inlined_call_operand.vmem [shape: f32[1,128], index: 8, kind: input, shape index: {}]   ;;  %s3504_s9 = inlined_call_operand.vmem [shape: f32[1,128], index: 9, kind: input, shape index: {}]   ;;  %s3505_s10 = inlined_call_operand.vmem [shape: f32[1,128], index: 10, kind: input, shape index: {}]   ;;  %s3506_s11 = inlined_call_operand.vmem [shape: f32[1,128], index: 11, kind: input, shape index: {}]   ;;  %s3507_s12 = inlined_call_operand.vmem [shape: f32[1,128], index: 12, kind: input, shape index: {}]   ;;  %s3508_s13 = inlined_call_operand.hbm [shape: f32[128,128], index: 13, kind: output, shape index: {}]  }
   0x1   :  { %19 = vsyncpa [#allocation4], 0  ;;  %s1999_s25 = smov [#allocation2]  }
   0x2   :  { %s37_s26 = sshll.u32 %s1999_s25, 4  ;;  %s38_s26 = int_to_ptr.vmem [resolvable:$true] %s37_s26 }
   0x3   :  { %s1963_s27 = scalar_lea.vmem %s38_s26, 6144  ;;  %p1968_p1 = scmp.lt.s32.totalorder %s38_s26, %s38_s26 }
   0x4   :  { %p1964_p0 = scmp.ne.s32.totalorder %s38_s26, %s1963_s27  ;;  %p1969_p2 = scmp.lt.s32.totalorder %s1963_s27, %s1963_s27 }
   0x6   :  { %p1970_p3 = por %p1969_p2, %p1968_p1 }
   0x8   :  { %p1971_p4 = pnand %p1970_p3, %p1964_p0 }
   0xa   :  { %1974 = shalt.err (!%p1971_p4)
}
   0xb   :  { %s2000_s28 = smov 128   ;;  %s2001_s29 = smov 8  }
   0xc   :  { %43 = dma.hbm_to_vmem [thread:$0]  %s3501_s6, 6144, %s38_s26, [#allocation3], %s2000_s28, %s2000_s28, %s2001_s29  }
   0xd   :  { %1995 = dma.done.wait [#allocation3], 6144  }
   0xe   :  { %1996 = vsyncadd [#allocation3], 4294961152  ;;  %v2002_v0 = vmov 0   ;;  %v123_v1 = vlaneseq  ;;  %v76_v2 = vld [vmem:[%s3496_s1 + $0x8] sm:$0xff]  ;;  %v75_v3 = vld [vmem:[%s3496_s1] sm:$0xff]  ;;  %s2003_s17 = smov 64  }
   0xf   :  { %1911 = vset.pattern.permute.xlu1 %v2002_v0  ;;  %1910 = vset.pattern.permute.xlu0 %v2002_v0  ;;  %v92_v5 = vld [vmem:[%s3497_s2 + $0x8] sm:$0xff]  ;;  %v91_v6 = vld [vmem:[%s3497_s2] sm:$0xff]  ;;  %v61_v9 = vld [vmem:[%s3495_s0 + $0x10] sm:$0xff]  ;;  %vm431_vm2 = vcmask 523264  }
  0x10   :  { %v2087_v4 = vshrl.u32 %v123_v1, 7  ;;  %149 = vperm.xlu1 %1911, %v76_v2   ;;  %144 = vperm.xlu0 %1910, %v75_v3   ;;  %v2098_v7 = vld [vmem:[%s3495_s0] sm:$0xff]  ;;  %v2103_v8 = vld [vmem:[%s3495_s0 + $0x8] sm:$0xff]  ;;  %v240_v13 = vrot.slane %v61_v9, 1  ;;  %v109_v14 = vrot.slane %v61_v9, 7  ;;  %v62_v16 = vld [vmem:[%s3495_s0 + $0x18] sm:$0xff] }
  0x11   :  { %v107_v10 = vrot.slane %v2098_v7, 7  ;;  %v108_v11 = vrot.slane %v2103_v8, 7  ;;  %v239_v12 = vrot.slane %v2103_v8, 1  ;;  %v1912_v15 = vpack.i.bf16 %v2103_v8, %v2098_v7  ;;  %v77_v18 = vld [vmem:[%s3496_s1 + $0x10] sm:$0xff]  ;;  %v63_v25 = vld [vmem:[%s3495_s0 + $0x20] sm:$0xff]  ;;  %v78_v26 = vld [vmem:[%s3496_s1 + $0x18] sm:$0xff] }
  0x12   :  { %vm254_vm0 = vcmp.lt.s32.totalorder %v2087_v4, 7  ;;  %vm125_vm1 = vcmp.lt.s32.totalorder %v2087_v4, 1  ;;  %v110_v21 = vrot.slane %v62_v16, 7  ;;  %v241_v22 = vrot.slane %v62_v16, 1  ;;  %v93_v27 = vld [vmem:[%s3497_s2 + $0x10] sm:$0xff]  ;;  %v64_v29 = vld [vmem:[%s3495_s0 + $0x28] sm:$0xff] }
  0x13   :  { %v2122_v17 = vsel %vm125_vm1, %v107_v10, %v108_v11  ;;  %v2131_v19 = vsel %vm254_vm0, %v239_v12, %v240_v13  ;;  %v2135_v20 = vsel %vm125_vm1, %v108_v11, %v109_v14  ;;  %v242_v28 = vrot.slane %v63_v25, 1  ;;  %v94_v33 = vld [vmem:[%s3497_s2 + $0x18] sm:$0xff]  ;;  %v2175_v37 = vld [vmem:[%s3495_s0 + $0x30] sm:$0xff]  ;;  %v477_v39 = vld [vmem:[%s3498_s3 + $0xe8] sm:$0xff] }
  0x14   :  { %278 = vperm.xlu1 %1911, %v92_v5   ;;  %273 = vperm.xlu0 %1910, %v91_v6   ;;  %v2139_v23 = vsel %vm125_vm1, %v109_v14, %v110_v21  ;;  %v2143_v24 = vsel %vm254_vm0, %v240_v13, %v241_v22  ;;  %v1917_v31 = vpack.i.bf16 %v62_v16, %v61_v9  ;;  %v243_v32 = vrot.slane %v64_v29, 1  ;;  %v479_v35 = vld [vmem:[%s3498_s3 + $0xf8] sm:$0xff]  ;;  %v478_v38 = vld [vmem:[%s3498_s3 + $0xf0] sm:$0xff]  ;;  %v476_v41 = vld [vmem:[%s3498_s3 + $0xe0] sm:$0xff] }
  0x15   :  { %v2160_v30 = vsel %vm254_vm0, %v241_v22, %v242_v28  ;;  %v111_v34 = vrot.slane %v63_v25, 7  ;;  %544 = vmatprep.subr.mxu0 %v479_v35  ;;  %v244_v42 = vrot.slane %v2175_v37, 1  ;;  %v95_v43 = vld [vmem:[%s3497_s2 + $0x20] sm:$0xff]  ;;  %v112_v45 = vrot.slane %v64_v29, 7  ;;  %v475_v46 = vld [vmem:[%s3498_s3 + $0xd8] sm:$0xff]  ;;  %v474_v48 = vld [vmem:[%s3498_s3 + $0xd0] sm:$0xff] }
  0x16   :  { %v2170_v36 = vsel %vm254_vm0, %v242_v28, %v243_v32  ;;  %v79_v44 = vld [vmem:[%s3496_s1 + $0x20] sm:$0xff]  ;;  %545 = vmatpush1.msra.mxu0 %v478_v38  ;;  %v473_v50 = vld [vmem:[%s3498_s3 + $0xc8] sm:$0xff]  ;;  %v113_v51 = vrot.slane %v2175_v37, 7  ;;  %v66_v56 = vld [vmem:[%s3495_s0 + $0x38] sm:$0xff]  ;;  %v1922_v58 = vpack.i.bf16 %v64_v29, %v63_v25 }
  0x17   :  { %v2185_v40 = vsel %vm125_vm1, %v110_v21, %v111_v34  ;;  %546 = vmatprep.subr.mxu0 %v477_v39  ;;  %v2203_v47 = vsel %vm254_vm0, %v243_v32, %v244_v42  ;;  %v2210_v49 = vsel %vm125_vm1, %v111_v34, %v112_v45  ;;  %v96_v52 = vld [vmem:[%s3497_s2 + $0x28] sm:$0xff]  ;;  %v472_v54 = vld [vmem:[%s3498_s3 + $0xc0] sm:$0xff]  ;;  %v471_v57 = vld [vmem:[%s3498_s3 + $0xb8] sm:$0xff]  ;;  %v114_v60 = vrot.slane %v66_v56, 7 }
  0x18   :  { %154 = vperm.xlu1 %1911, %v77_v18   ;;  %1913 = vrot.lane.b32.xlu0 %v1912_v15, %s2003_s17  ;;  %v80_v53 = vld [vmem:[%s3496_s1 + $0x28] sm:$0xff]  ;;  %v2227_v55 = vsel %vm125_vm1, %v112_v45, %v113_v51  ;;  %v470_v59 = vld [vmem:[%s3498_s3 + $0xb0] sm:$0xff]  ;;  %v245_v62 = vrot.slane %v66_v56, 1  ;;  %v468_v1 = vld [vmem:[%s3498_s3 + $0xa0] sm:$0xff]  ;;  %v1927_v18 = vpack.i.bf16 %v66_v56, %v2175_v37 }
  0x19   :  { %547 = vmatpush1.msra.mxu0 %v476_v41  ;;  %v81_v61 = vld [vmem:[%s3496_s1 + $0x30] sm:$0xff]  ;;  %v469_v63 = vld [vmem:[%s3498_s3 + $0xa8] sm:$0xff]  ;;  %v2246_v0 = vsel %vm125_vm1, %v113_v51, %v114_v60  ;;  %v2259_v3 = vld [vmem:[%s3495_s0 + $0x40] sm:$0xff] }
  0x1a   :  { %548 = vmatprep.subr.mxu0 %v475_v46  ;;  %v2253_v2 = vsel %vm254_vm0, %v244_v42, %v245_v62  ;;  %v467_v5 = vld [vmem:[%s3498_s3 + $0x98] sm:$0xff]  ;;  %v97_v9 = vld [vmem:[%s3497_s2 + $0x30] sm:$0xff]  ;;  %v246_v11 = vrot.slane %v2259_v3, 1  ;;  %v68_v14 = vld [vmem:[%s3495_s0 + $0x48] sm:$0xff] }
  0x1b   :  { %549 = vmatpush1.msra.mxu0 %v474_v48  ;;  %v82_v6 = vld [vmem:[%s3496_s1 + $0x38] sm:$0xff]  ;;  %v466_v13 = vld [vmem:[%s3498_s3 + $0x90] sm:$0xff]  ;;  %v465_v15 = vld [vmem:[%s3498_s3 + $0x88] sm:$0xff]  ;;  %v247_v22 = vrot.slane %v68_v14, 1  ;;  %v116_v38 = vrot.slane %v68_v14, 7 }
  0x1c   :  { %159 = vperm.xlu1 %1911, %v78_v26   ;;  %283 = vperm.xlu0 %1910, %v93_v27   ;;  %v2282_v16 = vsel %vm254_vm0, %v245_v62, %v246_v11  ;;  %v464_v21 = vld [vmem:[%s3498_s3 + $0x80] sm:$0xff]  ;;  %v98_v25 = vld [vmem:[%s3497_s2 + $0x38] sm:$0xff]  ;;  %v115_v26 = vrot.slane %v2259_v3, 7  ;;  %v2302_v29 = vld [vmem:[%s3495_s0 + $0x50] sm:$0xff] }
  0x1d   :  { %550 = vmatprep.subr.mxu0 %v473_v50  ;;  %v463_v27 = vld [vmem:[%s3498_s3 + $0x78] sm:$0xff]  ;;  %v2297_v28 = vsel %vm254_vm0, %v246_v11, %v247_v22  ;;  %v248_v34 = vrot.slane %v2302_v29, 1  ;;  %v99_v35 = vld [vmem:[%s3497_s2 + $0x40] sm:$0xff]  ;;  %v117_v45 = vrot.slane %v2302_v29, 7  ;;  %v100_v46 = vld [vmem:[%s3497_s2 + $0x48] sm:$0xff] }
  0x1e   :  { %551 = vmatpush1.msra.mxu0 %v472_v54  ;;  %v2309_v32 = vsel %vm125_vm1, %v114_v60, %v115_v26  ;;  %v83_v37 = vld [vmem:[%s3496_s1 + $0x40] sm:$0xff]  ;;  %v459_v42 = vld [vmem:[%s3498_s3 + $0x58] sm:$0xff]  ;;  %v84_v48 = vld [vmem:[%s3496_s1 + $0x48] sm:$0xff]  ;;  %v1932_v54 = vpack.i.bf16 %v68_v14, %v2259_v3 }
  0x1f   :  { %552 = vmatprep.subr.mxu0 %v471_v57  ;;  %v460_v39 = vld [vmem:[%s3498_s3 + $0x60] sm:$0xff]  ;;  %v2327_v41 = vsel %vm254_vm0, %v247_v22, %v248_v34  ;;  %v457_v50 = vld [vmem:[%s3498_s3 + $0x48] sm:$0xff]  ;;  %v2351_v51 = vsel %vm125_vm1, %v116_v38, %v117_v45  ;;  %v455_v56 = vld [vmem:[%s3498_s3 + $0x38] sm:$0xff] }
  0x20   :  { %1918 = vrot.lane.b32.xlu1 %v1917_v31, %s2003_s17  ;;  %288 = vperm.xlu0 %1910, %v94_v33   ;;  %v462_v31 = vld [vmem:[%s3498_s3 + $0x70] sm:$0xff]  ;;  %v461_v33 = vld [vmem:[%s3498_s3 + $0x68] sm:$0xff]  ;;  %v452_v3 = vld [vmem:[%s3498_s3 + $0x20] sm:$0xff] }
  0x21   :  { %553 = vmatpush1.msra.mxu0 %v470_v59  ;;  %v454_v60 = vld [vmem:[%s3498_s3 + $0x30] sm:$0xff]  ;;  %v453_v62 = vld [vmem:[%s3498_s3 + $0x28] sm:$0xff]  ;;  %v451_v11 = vld [vmem:[%s3498_s3 + $0x18] sm:$0xff] }
  0x22   :  { %554 = vmatprep.subr.mxu0 %v469_v63  ;;  %v2405_v14 = vld [vmem:[%s3495_s0 + $0x70] sm:$0xff] }
  0x23   :  { %555 = vmatpush1.msra.mxu0 %v468_v1  ;;  %v2384_v1 = vld [vmem:[%s3495_s0 + $0x60] sm:$0xff]  ;;  %v252_v22 = vrot.slane %v2405_v14, 1 }
  0x24   :  { %293 = vperm.xlu1 %1911, %v95_v43   ;;  %164 = vperm.xlu0 %1910, %v79_v44   ;;  %v2334_v43 = vsel %vm125_vm1, %v115_v26, %v116_v38  ;;  %v458_v44 = vld [vmem:[%s3498_s3 + $0x50] sm:$0xff] }
  0x25   :  { %556 = vmatprep.subr.mxu0 %v467_v5  ;;  %v86_v5 = vld [vmem:[%s3496_s1 + $0x58] sm:$0xff]  ;;  %v494_v38 = vld [vmem:[%s3498_s3 + $0x170] sm:$0xff] }
  0x26   :  { %557 = vmatpush1.msra.mxu0 %v466_v13  ;;  %v72_v13 = vld [vmem:[%s3495_s0 + $0x68] sm:$0xff] }
  0x27   :  { %558 = vmatprep.subr.mxu0 %v465_v15  ;;  %v450_v15 = vld [vmem:[%s3498_s3 + $0x10] sm:$0xff]  ;;  %v251_v26 = vrot.slane %v72_v13, 1 }
  0x28   :  { %298 = vperm.xlu1 %1911, %v96_v52   ;;  %169 = vperm.xlu0 %1910, %v80_v53   ;;  %v70_v52 = vld [vmem:[%s3495_s0 + $0x58] sm:$0xff]  ;;  %v456_v53 = vld [vmem:[%s3498_s3 + $0x40] sm:$0xff] }
  0x29   :  { %559 = vmatpush1.msra.mxu0 %v464_v21  ;;  %v118_v57 = vrot.slane %v70_v52, 7  ;;  %v249_v59 = vrot.slane %v70_v52, 1  ;;  %v1937_v21 = vpack.i.bf16 %v70_v52, %v2302_v29  ;;  %v491_v52 = vld [vmem:[%s3498_s3 + $0x158] sm:$0xff] }
  0x2a   :  { %560 = vmatprep.subr.mxu0 %v463_v27  ;;  %v102_v27 = vld [vmem:[%s3497_s2 + $0x58] sm:$0xff] }
  0x2b   :  { %561 = vmatpush1.msra.mxu0 %v462_v31  ;;  %v2378_v63 = vsel %vm254_vm0, %v248_v34, %v249_v59  ;;  %v119_v31 = vrot.slane %v2384_v1, 7  ;;  %v495_v34 = vld [vmem:[%s3498_s3 + $0x178] sm:$0xff] }
  0x2c   :  { %174 = vperm.xlu1 %1911, %v81_v61   ;;  %1923 = vrot.lane.b32.xlu0 %v1922_v58, %s2003_s17  ;;  %v85_v58 = vld [vmem:[%s3496_s1 + $0x50] sm:$0xff]  ;;  %v2371_v61 = vsel %vm125_vm1, %v117_v45, %v118_v57  ;;  %v120_v45 = vrot.slane %v72_v13, 7 }
  0x2d   :  { %562 = vmatprep.subr.mxu0 %v461_v33  ;;  %v448_v33 = vld [vmem:[%s3498_s3] sm:$0xff] }
  0x2e   :  { %563 = vmatpush1.msra.mxu0 %v460_v39  ;;  %v2444_v39 = vsel %vm254_vm0, %v251_v26, %v252_v22 }
  0x2f   :  { %564 = vmatprep.subr.mxu0 %v459_v42  ;;  %v103_v42 = vld [vmem:[%s3497_s2 + $0x60] sm:$0xff] }
  0x30   :  { %179 = vperm.xlu1 %1911, %v82_v6   ;;  %303 = vperm.xlu0 %1910, %v97_v9   ;;  %v101_v6 = vld [vmem:[%s3497_s2 + $0x50] sm:$0xff]  ;;  %v250_v9 = vrot.slane %v2384_v1, 1 }
  0x31   :  { %565 = vmatpush1.msra.mxu0 %v458_v44  ;;  %v87_v44 = vld [vmem:[%s3496_s1 + $0x60] sm:$0xff] }
  0x32   :  { %566 = vmatprep.subr.mxu0 %v457_v50  ;;  %v2428_v29 = vsel %vm254_vm0, %v250_v9, %v251_v26  ;;  %v2460_v50 = vsel %vm125_vm1, %v119_v31, %v120_v45  ;;  %v483_v26 = vld [vmem:[%s3498_s3 + $0x118] sm:$0xff] }
  0x33   :  { %567 = vmatpush1.msra.mxu0 %v456_v53 }
  0x34   :  { %1928 = vrot.lane.b32.xlu1 %v1927_v18, %s2003_s17  ;;  %308 = vperm.xlu0 %1910, %v98_v25   ;;  %v2412_v18 = vsel %vm254_vm0, %v249_v59, %v250_v9  ;;  %v449_v25 = vld [vmem:[%s3498_s3 + $0x8] sm:$0xff]  ;;  %v490_v59 = vld [vmem:[%s3498_s3 + $0x150] sm:$0xff] }
  0x35   :  { %568 = vmatprep.subr.mxu0 %v455_v56  ;;  %v88_v56 = vld [vmem:[%s3496_s1 + $0x68] sm:$0xff]  ;;  %v89_v9 = vld [vmem:[%s3496_s1 + $0x70] sm:$0xff] }
  0x36   :  { %569 = vmatpush1.msra.mxu0 %v454_v60 }
  0x37   :  { %570 = vmatprep.subr.mxu0 %v453_v62  ;;  %v489_v62 = vld [vmem:[%s3498_s3 + $0x148] sm:$0xff] }
  0x38   :  { %313 = vperm.xlu1 %1911, %v99_v35   ;;  %184 = vperm.xlu0 %1910, %v83_v37   ;;  %v2435_v35 = vsel %vm125_vm1, %v118_v57, %v119_v31  ;;  %v121_v37 = vrot.slane %v2405_v14, 7  ;;  %v2478_v57 = vld [vmem:[%s3495_s0 + $0x78] sm:$0xff] }
  0x39   :  { %571 = vmatpush1.msra.mxu0 %v452_v3  ;;  %v253_v60 = vrot.slane %v2478_v57, 1  ;;  %v1942_v3 = vpack.i.bf16 %v72_v13, %v2384_v1  ;;  %v486_v1 = vld [vmem:[%s3498_s3 + $0x130] sm:$0xff]  ;;  %v106_v31 = vld [vmem:[%s3497_s2 + $0x78] sm:$0xff] }
  0x3a   :  { %572 = vmatprep.subr.mxu0 %v451_v11  ;;  %v2467_v53 = vsel %vm125_vm1, %v120_v45, %v121_v37  ;;  %v487_v11 = vld [vmem:[%s3498_s3 + $0x138] sm:$0xff] }
  0x3b   :  { %573 = vmatpush1.msra.mxu0 %v450_v15  ;;  %v2509_v13 = vsel %vm254_vm0, %v252_v22, %v253_v60  ;;  %v485_v15 = vld [vmem:[%s3498_s3 + $0x128] sm:$0xff]  ;;  %v484_v22 = vld [vmem:[%s3498_s3 + $0x120] sm:$0xff] }
  0x3c   :  { %318 = vperm.xlu1 %1911, %v100_v46   ;;  %189 = vperm.xlu0 %1910, %v84_v48   ;;  %v493_v46 = vld [vmem:[%s3498_s3 + $0x168] sm:$0xff]  ;;  %v492_v48 = vld [vmem:[%s3498_s3 + $0x160] sm:$0xff] }
  0x3d   :  { %574 = vmatprep.subr.mxu0 %v449_v25  ;;  %v105_v25 = vld [vmem:[%s3497_s2 + $0x70] sm:$0xff] }
  0x3e   :  { %575 = vmatpush1.msra.mxu0 %v448_v33  ;;  %v481_v33 = vld [vmem:[%s3498_s3 + $0x108] sm:$0xff] }
  0x3f   :  { %592 = vmatprep.subr.mxu0 %v495_v34  ;;  %v480_v34 = vld [vmem:[%s3498_s3 + $0x100] sm:$0xff] }
  0x40   :  { %194 = vperm.xlu1 %1911, %v85_v58   ;;  %1933 = vrot.lane.b32.xlu0 %v1932_v54, %s2003_s17  ;;  %v104_v54 = vld [vmem:[%s3497_s2 + $0x68] sm:$0xff]  ;;  %v122_v58 = vrot.slane %v2478_v57, 7 }
  0x41   :  { %593 = vmatpush2.msra.mxu0 %v494_v38 }
  0x42   :  { %594 = vmatprep.subr.mxu0 %v493_v46 }
  0x43   :  { %595 = vmatpush2.msra.mxu0 %v492_v48  ;;  %v141_v48 = vsel %vm125_vm1, %v122_v58, %v107_v10 }
  0x44   :  { %199 = vperm.xlu1 %1911, %v86_v5   ;;  %323 = vperm.xlu0 %1910, %v101_v6   ;;  %v488_v5 = vld [vmem:[%s3498_s3 + $0x140] sm:$0xff]  ;;  %v2494_v6 = vsel %vm125_vm1, %v121_v37, %v122_v58  ;;  %v238_v37 = vrot.slane %v2098_v7, 1 }
  0x45   :  { %596 = vmatprep.subr.mxu0 %v491_v52 }
  0x46   :  { %597 = vmatpush2.msra.mxu0 %v490_v59 }
  0x47   :  { %598 = vmatprep.subr.mxu0 %v489_v62 }
  0x48   :  { %1938 = vrot.lane.b32.xlu1 %v1937_v21, %s2003_s17  ;;  %328 = vperm.xlu0 %1910, %v102_v27   ;;  %v90_v21 = vld [vmem:[%s3496_s1 + $0x78] sm:$0xff]  ;;  %v482_v27 = vld [vmem:[%s3498_s3 + $0x110] sm:$0xff] }
  0x49   :  { %599 = vmatpush2.msra.mxu0 %v488_v5 }
  0x4a   :  { %600 = vmatprep.subr.mxu0 %v487_v11 }
  0x4b   :  { %601 = vmatpush2.msra.mxu0 %v486_v1 }
  0x4c   :  { %333 = vperm.xlu1 %1911, %v103_v42   ;;  %204 = vperm.xlu0 %1910, %v87_v44   ;;  %v269_v44 = vsel %vm254_vm0, %v238_v37, %v239_v12 }
  0x4d   :  { %602 = vmatprep.subr.mxu0 %v485_v15 }
  0x4e   :  { %603 = vmatpush2.msra.mxu0 %v484_v22 }
  0x4f   :  { %604 = vmatprep.subr.mxu0 %v483_v26 }
  0x50   :  { %338 = vperm.xlu1 %1911, %v104_v54   ;;  %209 = vperm.xlu0 %1910, %v88_v56  }
  0x51   :  { %605 = vmatpush2.msra.mxu0 %v482_v27 }
  0x52   :  { %606 = vmatprep.subr.mxu0 %v481_v33 }
  0x53   :  { %607 = vmatpush2.msra.mxu0 %v480_v34 }
  0x54   :  { %214 = vperm.xlu1 %1911, %v89_v9   ;;  %1943 = vrot.lane.b32.xlu0 %v1942_v3, %s2003_s17 }
  0x58   :  { %219 = vperm.xlu1 %1911, %v90_v21   ;;  %343 = vperm.xlu0 %1910, %v105_v25  }
  0x5c   :  { %348 = vperm.xlu0 %1910, %v106_v31   ;;  %411 = vrot.lane.b32.xlu1 %v2405_v14, %s2003_s17 }
  0x60   :  { %413 = vrot.lane.b32.xlu0 %v2478_v57, %s2003_s17 }
  0x8b   :  { %v2544_v38 = vpop.permute.xlu1 %149  ;;  %v2546_v42 = vpop.permute.xlu0 %144 }
  0x8c   :  { %v222_v54 = vmul.f32 %v2546_v42, %v141_v48  ;;  %v223_v10 = vmul.f32 %v2544_v38, %v2122_v17 }
  0x8f   :  { %v2554_v45 = vpop.permute.xlu1 %278  ;;  %v2556_v14 = vpop.permute.xlu0 %273 }
  0x90   :  { %v351_v46 = vmul.f32 %v2556_v14, %v269_v44  ;;  %v352_v56 = vmul.f32 %v2554_v45, %v2131_v19 }
  0x92   :  { %1688 = vmatprep.mubr.msk.f32.mxu0 %vm431_vm2, %v351_v46 }
  0x93   :  { %v2564_v8 = vpop.permute.xlu1 %154  ;;  %v1914_v52 = vpop.permute.xlu0 %1913 }
  0x94   :  { %v1915_v12 = vunpack.i.l.bf16 %v1914_v52  ;;  %v1916_v59 = vunpack.i.h.bf16 %v1914_v52  ;;  %v224_v1 = vmul.f32 %v2564_v8, %v2135_v20 }
  0x96   :  { %v432_v62 = vsel %vm431_vm2, %v222_v54, %v1915_v12  ;;  %v433_v9 = vsel %vm431_vm2, %v223_v10, %v1916_v59 }
  0x97   :  { %v2570_v3 = vpop.permute.xlu1 %159  ;;  %v2572_v5 = vpop.permute.xlu0 %283  ;;  %609 = vmatmul.mubr.f32.vlgmr.msra.gmra.mxu0 %v432_v62 }
  0x98   :  { %1689 = vmatprep.mubr.msk.f32.mxu0 %vm431_vm2, %v352_v56  ;;  %v353_v58 = vmul.f32 %v2572_v5, %v2143_v24  ;;  %v225_v26 = vmul.f32 %v2570_v3, %v2139_v23 }
  0x9b   :  { %v1919_v11 = vpop.permute.xlu1 %1918  ;;  %v2580_v19 = vpop.permute.xlu0 %288  ;;  %615 = vmatmul.mubr.f32.gmra.mxu0 %v433_v9 }
  0x9c   :  { %v1920_v15 = vunpack.i.l.bf16 %v1919_v11  ;;  %1690 = vmatprep.mubr.msk.f32.mxu0 %vm431_vm2, %v353_v58  ;;  %v1921_v21 = vunpack.i.h.bf16 %v1919_v11  ;;  %v354_v17 = vmul.f32 %v2580_v19, %v2160_v30 }
  0x9e   :  { %v434_v25 = vsel %vm431_vm2, %v224_v1, %v1920_v15  ;;  %v435_v27 = vsel %vm431_vm2, %v225_v26, %v1921_v21 }
  0x9f   :  { %v2588_v22 = vpop.permute.xlu1 %293  ;;  %v2590_v24 = vpop.permute.xlu0 %164  ;;  %621 = vmatmul.mubr.f32.gmra.mxu0 %v434_v25 }
  0xa0   :  { %1691 = vmatprep.mubr.msk.f32.mxu0 %vm431_vm2, %v354_v17  ;;  %v355_v20 = vmul.f32 %v2588_v22, %v2170_v36  ;;  %v226_v23 = vmul.f32 %v2590_v24, %v2185_v40 }
  0xa3   :  { %v2598_v31 = vpop.permute.xlu1 %298  ;;  %v2600_v30 = vpop.permute.xlu0 %169  ;;  %627 = vmatmul.mubr.f32.gmra.mxu0 %v435_v27 }
  0xa4   :  { %1692 = vmatprep.mubr.msk.f32.mxu0 %vm431_vm2, %v355_v20  ;;  %v356_v46 = vmul.f32 %v2598_v31, %v2203_v47  ;;  %v227_v12 = vmul.f32 %v2600_v30, %v2210_v49 }
  0xa7   :  { %v2603_v33 = vpop.permute.xlu1 %174  ;;  %v1924_v34 = vpop.permute.xlu0 %1923 }
  0xa8   :  { %v1925_v44 = vunpack.i.l.bf16 %v1924_v34  ;;  %v1926_v36 = vunpack.i.h.bf16 %v1924_v34  ;;  %v228_v62 = vmul.f32 %v2603_v33, %v2227_v55 }
  0xaa   :  { %v436_v48 = vsel %vm431_vm2, %v226_v23, %v1925_v44  ;;  %v437_v56 = vsel %vm431_vm2, %v227_v12, %v1926_v36 }
  0xab   :  { %v2610_v52 = vpop.permute.xlu1 %179  ;;  %v2612_v54 = vpop.permute.xlu0 %303  ;;  %633 = vmatmul.mubr.f32.gmra.mxu0 %v436_v48 }
  0xac   :  { %1693 = vmatprep.mubr.msk.f32.mxu0 %vm431_vm2, %v356_v46  ;;  %v357_v40 = vmul.f32 %v2612_v54, %v2253_v2  ;;  %v229_v1 = vmul.f32 %v2610_v52, %v2246_v0 }
  0xaf   :  { %v1929_v59 = vpop.permute.xlu1 %1928  ;;  %v2620_v47 = vpop.permute.xlu0 %308  ;;  %639 = vmatmul.mubr.f32.gmra.mxu0 %v437_v56 }
  0xb0   :  { %3533 = vst [vmem:[#allocation8_spill] sm:$0xff] %v2620_v47  ;;  %v1930_v10 = vunpack.i.l.bf16 %v1929_v59  ;;  %1694 = vmatprep.mubr.msk.f32.mxu0 %vm431_vm2, %v357_v40  ;;  %v1931_v58 = vunpack.i.h.bf16 %v1929_v59  ;;  %v358_v49 = vmul.f32 %v2620_v47, %v2282_v16 }
  0xb2   :  { %v438_v9 = vsel %vm431_vm2, %v228_v62, %v1930_v10  ;;  %v439_v15 = vsel %vm431_vm2, %v229_v1, %v1931_v58 }
  0xb3   :  { %v2628_v11 = vpop.permute.xlu1 %313  ;;  %v2630_v2 = vpop.permute.xlu0 %184  ;;  %645 = vmatmul.mubr.f32.gmra.mxu0 %v438_v9 }
  0xb4   :  { %3534 = vst [vmem:[#allocation9_spill] sm:$0xff] %v2628_v11  ;;  %1695 = vmatprep.mubr.msk.f32.mxu0 %vm431_vm2, %v358_v49  ;;  %v359_v55 = vmul.f32 %v2628_v11, %v2297_v28  ;;  %v230_v0 = vmul.f32 %v2630_v2, %v2309_v32 }
  0xb7   :  { %v2638_v21 = vpop.permute.xlu1 %318  ;;  %v2640_v16 = vpop.permute.xlu0 %189  ;;  %651 = vmatmul.mubr.f32.gmra.mxu0 %v439_v15 }
  0xb8   :  { %3535 = vst [vmem:[#allocation10_spill] sm:$0xff] %v2638_v21  ;;  %1696 = vmatprep.mubr.msk.f32.mxu0 %vm431_vm2, %v359_v55  ;;  %v360_v20 = vmul.f32 %v2638_v21, %v2327_v41  ;;  %v231_v44 = vmul.f32 %v2640_v16, %v2334_v43 }
  0xbb   :  { %v2643_v17 = vpop.permute.xlu1 %194  ;;  %v1934_v25 = vpop.permute.xlu0 %1933 }
  0xbc   :  { %v1935_v26 = vunpack.i.l.bf16 %v1934_v25  ;;  %v1936_v28 = vunpack.i.h.bf16 %v1934_v25  ;;  %v232_v48 = vmul.f32 %v2643_v17, %v2351_v51 }
  0xbe   :  { %v440_v27 = vsel %vm431_vm2, %v230_v0, %v1935_v26  ;;  %v441_v46 = vsel %vm431_vm2, %v231_v44, %v1936_v28 }
  0xbf   :  { %v2650_v34 = vpop.permute.xlu1 %199  ;;  %v2652_v23 = vpop.permute.xlu0 %323  ;;  %657 = vmatmul.mubr.f32.gmra.mxu0 %v440_v27  ;;  %v270_v27 = vsel %vm254_vm0, %v253_v60, %v238_v37  ;;  %v961_v60 = vld [vmem:[#allocation2 + $0xf8] sm:$0xff]  ;;  %v960_v37 = vld [vmem:[#allocation2 + $0xf0] sm:$0xff] }
  0xc0   :  { %3536 = vst [vmem:[#allocation11_spill] sm:$0xff] %v2652_v23  ;;  %1697 = vmatprep.mubr.msk.f32.mxu0 %vm431_vm2, %v360_v20  ;;  %v361_v32 = vmul.f32 %v2652_v23, %v2378_v63  ;;  %v233_v62 = vmul.f32 %v2650_v34, %v2371_v61  ;;  %1872 = vmatprep.subr.mxu1 %v961_v60 }
  0xc1   :  { %1704 = vmatprep.subr.mxu0 %v961_v60  ;;  %v930_v60 = vld [vmem:[#allocation2] sm:$0xff] }
  0xc3   :  { %v1939_v36 = vpop.permute.xlu1 %1938  ;;  %v2660_v41 = vpop.permute.xlu0 %328  ;;  %663 = vmatmul.mubr.f32.gmra.mxu0 %v441_v46  ;;  %v944_v46 = vld [vmem:[#allocation2 + $0x70] sm:$0xff] }
  0xc4   :  { %3537 = vst [vmem:[#allocation12_spill] sm:$0xff] %v2660_v41  ;;  %v1940_v12 = vunpack.i.l.bf16 %v1939_v36  ;;  %1698 = vmatprep.mubr.msk.f32.mxu0 %vm431_vm2, %v361_v32  ;;  %v1941_v40 = vunpack.i.h.bf16 %v1939_v36  ;;  %v362_v43 = vmul.f32 %v2660_v41, %v2412_v18  ;;  %v959_v36 = vld [vmem:[#allocation2 + $0xe8] sm:$0xff] }
  0xc6   :  { %v442_v56 = vsel %vm431_vm2, %v232_v48, %v1940_v12  ;;  %v443_v10 = vsel %vm431_vm2, %v233_v62, %v1941_v40  ;;  %v958_v48 = vld [vmem:[#allocation2 + $0xe0] sm:$0xff]  ;;  %v957_v40 = vld [vmem:[#allocation2 + $0xd8] sm:$0xff]  ;;  %v940_v62 = vld [vmem:[#allocation2 + $0x50] sm:$0xff] }
  0xc7   :  { %v2668_v59 = vpop.permute.xlu1 %333  ;;  %v2670_v63 = vpop.permute.xlu0 %204  ;;  %669 = vmatmul.mubr.f32.gmra.mxu0 %v442_v56  ;;  %v942_v12 = vld [vmem:[#allocation2 + $0x60] sm:$0xff]  ;;  %v956_v56 = vld [vmem:[#allocation2 + $0xd0] sm:$0xff] }
  0xc8   :  { %3538 = vst [vmem:[#allocation13_spill] sm:$0xff] %v2668_v59  ;;  %1699 = vmatprep.mubr.msk.f32.mxu0 %vm431_vm2, %v362_v43  ;;  %v363_v51 = vmul.f32 %v2668_v59, %v2428_v29  ;;  %v234_v61 = vmul.f32 %v2670_v63, %v2435_v35  ;;  %v941_v43 = vld [vmem:[#allocation2 + $0x58] sm:$0xff] }
  0xcb   :  { %v2678_v58 = vpop.permute.xlu1 %338  ;;  %v2680_v18 = vpop.permute.xlu0 %209  ;;  %675 = vmatmul.mubr.f32.gmra.mxu0 %v443_v10  ;;  %v939_v10 = vld [vmem:[#allocation2 + $0x48] sm:$0xff] }
  0xcc   :  { %3539 = vst [vmem:[#allocation14_spill] sm:$0xff] %v2678_v58  ;;  %1700 = vmatprep.mubr.msk.f32.mxu0 %vm431_vm2, %v363_v51  ;;  %v364_v55 = vmul.f32 %v2678_v58, %v2444_v39  ;;  %v235_v26 = vmul.f32 %v2680_v18, %v2460_v50  ;;  %v955_v51 = vld [vmem:[#allocation2 + $0xc8] sm:$0xff] }
  0xcf   :  { %v2683_v49 = vpop.permute.xlu1 %214  ;;  %v1944_v9 = vpop.permute.xlu0 %1943 }
  0xd0   :  { %v1945_v1 = vunpack.i.l.bf16 %v1944_v9  ;;  %v1946_v29 = vunpack.i.h.bf16 %v1944_v9  ;;  %v236_v50 = vmul.f32 %v2683_v49, %v2467_v53  ;;  %v945_v53 = vld [vmem:[#allocation2 + $0x78] sm:$0xff]  ;;  %v954_v9 = vld [vmem:[#allocation2 + $0xc0] sm:$0xff] }
  0xd1   :  { %1888 = vmatpush3.msra.mxu1 %v945_v53  ;;  %1705 = vmatpush3.msra.mxu0 %v945_v53  ;;  %v2717_v53 = vld [vmem:[#allocation2 + $0x178] sm:$0xff] }
  0xd2   :  { %v444_v15 = vsel %vm431_vm2, %v234_v61, %v1945_v1  ;;  %v445_v20 = vsel %vm431_vm2, %v235_v26, %v1946_v29  ;;  %1873 = vmatprep.subr.mxu1 %v960_v37  ;;  %1706 = vmatprep.subr.mxu0 %v960_v37  ;;  %v938_v61 = vld [vmem:[#allocation2 + $0x40] sm:$0xff]  ;;  %v953_v1 = vld [vmem:[#allocation2 + $0xb8] sm:$0xff]  ;;  %v952_v29 = vld [vmem:[#allocation2 + $0xb0] sm:$0xff] }
  0xd3   :  { %v2690_v25 = vpop.permute.xlu1 %219  ;;  %v2692_v0 = vpop.permute.xlu0 %343  ;;  %681 = vmatmul.mubr.f32.gmra.mxu0 %v444_v15  ;;  %1889 = vmatpush3.msra.mxu1 %v944_v46  ;;  %v936_v15 = vld [vmem:[#allocation2 + $0x30] sm:$0xff]  ;;  %v951_v26 = vld [vmem:[#allocation2 + $0xa8] sm:$0xff] }
  0xd4   :  { %3540 = vst [vmem:[#allocation15_spill] sm:$0xff] %v2692_v0  ;;  %1701 = vmatprep.mubr.msk.f32.mxu0 %vm431_vm2, %v364_v55  ;;  %v365_v35 = vmul.f32 %v2692_v0, %v2509_v13  ;;  %v237_v7 = vmul.f32 %v2690_v25, %v2494_v6  ;;  %1707 = vmatpush3.msra.mxu0 %v944_v46  ;;  %v943_v6 = vld [vmem:[#allocation2 + $0x68] sm:$0xff]  ;;  %v937_v55 = vld [vmem:[#allocation2 + $0x38] sm:$0xff] }
  0xd5   :  { %1874 = vmatprep.subr.mxu1 %v959_v36  ;;  %1708 = vmatprep.subr.mxu0 %v959_v36 }
  0xd6   :  { %1890 = vmatpush3.msra.mxu1 %v943_v6  ;;  %1709 = vmatpush3.msra.mxu0 %v943_v6 }
  0xd7   :  { %v412_v28 = vpop.permute.xlu1 %411  ;;  %v2700_v39 = vpop.permute.xlu0 %348  ;;  %687 = vmatmul.mubr.f32.gmra.mxu0 %v445_v20  ;;  %1875 = vmatprep.subr.mxu1 %v958_v48  ;;  %v950_v20 = vld [vmem:[#allocation2 + $0xa0] sm:$0xff] }
  0xd8   :  { %3541 = vst [vmem:[#allocation16_spill] sm:$0xff] %v2700_v39  ;;  %1702 = vmatprep.mubr.msk.f32.mxu0 %vm431_vm2, %v365_v35  ;;  %v366_v13 = vmul.f32 %v2700_v39, %v270_v27  ;;  %v446_v44 = vsel %vm431_vm2, %v236_v50, %v412_v28  ;;  %1710 = vmatprep.subr.mxu0 %v958_v48  ;;  %v935_v35 = vld [vmem:[#allocation2 + $0x28] sm:$0xff]  ;;  %v934_v28 = vld [vmem:[#allocation2 + $0x20] sm:$0xff]  ;;  %v949_v27 = vld [vmem:[#allocation2 + $0x98] sm:$0xff] }
  0xd9   :  { %1891 = vmatpush3.msra.mxu1 %v942_v12  ;;  %1711 = vmatpush3.msra.mxu0 %v942_v12  ;;  %v933_v50 = vld [vmem:[#allocation2 + $0x18] sm:$0xff] }
  0xda   :  { %1876 = vmatprep.subr.mxu1 %v957_v40  ;;  %1712 = vmatprep.subr.mxu0 %v957_v40 }
  0xdb   :  { %v414_v32 = vpop.permute.xlu0 %413  ;;  %693 = vmatmul.mubr.f32.gmra.mxu0 %v446_v44  ;;  %1892 = vmatpush3.msra.mxu1 %v941_v43  ;;  %v932_v44 = vld [vmem:[#allocation2 + $0x10] sm:$0xff] }
  0xdc   :  { %1703 = vmatprep.mubr.msk.f32.mxu0 %vm431_vm2, %v366_v13  ;;  %v447_v57 = vsel %vm431_vm2, %v237_v7, %v414_v32  ;;  %1713 = vmatpush3.msra.mxu0 %v941_v43  ;;  %v948_v13 = vld [vmem:[#allocation2 + $0x90] sm:$0xff]  ;;  %v947_v32 = vld [vmem:[#allocation2 + $0x88] sm:$0xff] }
  0xdd   :  { %1877 = vmatprep.subr.mxu1 %v956_v56  ;;  %1714 = vmatprep.subr.mxu0 %v956_v56  ;;  %v931_v7 = vld [vmem:[#allocation2 + $0x8] sm:$0xff] }
  0xde   :  { %1893 = vmatpush3.msra.mxu1 %v940_v62  ;;  %1715 = vmatpush3.msra.mxu0 %v940_v62 }
  0xdf   :  { %699 = vmatmul.mubr.f32.gmra.mxu0 %v447_v57  ;;  %1878 = vmatprep.subr.mxu1 %v955_v51  ;;  %v946_v57 = vld [vmem:[#allocation2 + $0x80] sm:$0xff] }
  0xe0   :  { %1716 = vmatprep.subr.mxu0 %v955_v51  ;;  %1894 = vmatpush3.msra.mxu1 %v939_v10 }
  0xe1   :  { %1717 = vmatpush3.msra.mxu0 %v939_v10  ;;  %1879 = vmatprep.subr.mxu1 %v954_v9 }
  0xe2   :  { %1718 = vmatprep.subr.mxu0 %v954_v9  ;;  %1895 = vmatpush3.msra.mxu1 %v938_v61 }
  0xe3   :  { %1719 = vmatpush3.msra.mxu0 %v938_v61  ;;  %1880 = vmatprep.subr.mxu1 %v953_v1 }
  0xe4   :  { %1720 = vmatprep.subr.mxu0 %v953_v1  ;;  %1896 = vmatpush3.msra.mxu1 %v937_v55 }
  0xe5   :  { %1721 = vmatpush3.msra.mxu0 %v937_v55  ;;  %1881 = vmatprep.subr.mxu1 %v952_v29 }
  0xe6   :  { %1722 = vmatprep.subr.mxu0 %v952_v29  ;;  %1897 = vmatpush3.msra.mxu1 %v936_v15 }
  0xe7   :  { %1723 = vmatpush3.msra.mxu0 %v936_v15  ;;  %1882 = vmatprep.subr.mxu1 %v951_v26 }
  0xe8   :  { %1724 = vmatprep.subr.mxu0 %v951_v26  ;;  %1898 = vmatpush3.msra.mxu1 %v935_v35 }
  0xe9   :  { %1725 = vmatpush3.msra.mxu0 %v935_v35  ;;  %1883 = vmatprep.subr.mxu1 %v950_v20 }
  0xea   :  { %1726 = vmatprep.subr.mxu0 %v950_v20  ;;  %1899 = vmatpush3.msra.mxu1 %v934_v28 }
  0xeb   :  { %1727 = vmatpush3.msra.mxu0 %v934_v28  ;;  %1884 = vmatprep.subr.mxu1 %v949_v27 }
  0xec   :  { %1728 = vmatprep.subr.mxu0 %v949_v27  ;;  %1900 = vmatpush3.msra.mxu1 %v933_v50 }
  0xed   :  { %1729 = vmatpush3.msra.mxu0 %v933_v50  ;;  %1885 = vmatprep.subr.mxu1 %v948_v13 }
  0xee   :  { %1730 = vmatprep.subr.mxu0 %v948_v13  ;;  %1901 = vmatpush3.msra.mxu1 %v932_v44 }
  0xef   :  { %1731 = vmatpush3.msra.mxu0 %v932_v44  ;;  %1886 = vmatprep.subr.mxu1 %v947_v32 }
  0xf0   :  { %1732 = vmatprep.subr.mxu0 %v947_v32  ;;  %1902 = vmatpush3.msra.mxu1 %v931_v7 }
  0xf1   :  { %1733 = vmatpush3.msra.mxu0 %v931_v7  ;;  %1887 = vmatprep.subr.mxu1 %v946_v57 }
  0xf2   :  { %1734 = vmatprep.subr.mxu0 %v946_v57  ;;  %1903 = vmatpush3.msra.mxu1 %v930_v60 }
  0xf3   :  { %1735 = vmatpush3.msra.mxu0 %v930_v60  ;;  %1816 = vmatprep.subr.mxu1 %v2717_v53 }
 0x157   :  { %v2720_v37 = vpop.f32.mrf.mxu0 }
 0x158   :  { %v727_v20 = vmul.f32 %v2720_v37, %v2720_v37 }
 0x159   :  { %v2722_v46 = vpop.f32.mrf.mxu0 }
 0x15a   :  { %3542 = vst [vmem:[#allocation17_spill] sm:$0xff] %v2722_v46 }
 0x15b   :  { %v2724_v36 = vpop.f32.mrf.mxu0 }
 0x15c   :  { %v728_v26 = vmul.f32 %v2724_v36, %v2724_v36  ;;  %v705_v28 = vadd.f32 %v2724_v36, %v2720_v37 }
 0x15d   :  { %v2726_v6 = vpop.f32.mrf.mxu0 }
 0x15e   :  { %3543 = vst [vmem:[#allocation18_spill] sm:$0xff] %v2726_v6  ;;  %v743_v13 = vadd.f32 %v728_v26, %v727_v20 }
 0x15f   :  { %v2728_v48 = vpop.f32.mrf.mxu0 }
 0x160   :  { %v729_v27 = vmul.f32 %v2728_v48, %v2728_v48  ;;  %v706_v44 = vadd.f32 %v705_v28, %v2728_v48 }
 0x161   :  { %v2730_v12 = vpop.f32.mrf.mxu0 }
 0x162   :  { %3544 = vst [vmem:[#allocation19_spill] sm:$0xff] %v2730_v12  ;;  %v744_v57 = vadd.f32 %v743_v13, %v729_v27 }
 0x163   :  { %v2732_v40 = vpop.f32.mrf.mxu0 }
 0x164   :  { %v730_v32 = vmul.f32 %v2732_v40, %v2732_v40  ;;  %v707_v60 = vadd.f32 %v706_v44, %v2732_v40 }
 0x165   :  { %v2734_v43 = vpop.f32.mrf.mxu0 }
 0x166   :  { %3545 = vst [vmem:[#allocation20_spill] sm:$0xff] %v2734_v43 }
 0x16b   :  { %v2736_v56 = vpop.f32.mrf.mxu0 }
 0x16d   :  { %v2738_v62 = vpop.f32.mrf.mxu0 }
 0x16e   :  { %3546 = vst [vmem:[#allocation21_spill] sm:$0xff] %v2738_v62 }
 0x16f   :  { %v2740_v51 = vpop.f32.mrf.mxu0 }
 0x170   :  { %v732_v26 = vmul.f32 %v2740_v51, %v2740_v51 }
 0x171   :  { %v2742_v10 = vpop.f32.mrf.mxu0 }
 0x172   :  { %3547 = vst [vmem:[#allocation22_spill] sm:$0xff] %v2742_v10  ;;  %v708_v10 = vadd.f32 %v707_v60, %v2736_v56 }
 0x173   :  { %v2744_v9 = vpop.f32.mrf.mxu0 }
 0x174   :  { %v709_v28 = vadd.f32 %v708_v10, %v2740_v51 }
 0x175   :  { %v2746_v61 = vpop.f32.mrf.mxu0 }
 0x176   :  { %3548 = vst [vmem:[#allocation23_spill] sm:$0xff] %v2746_v61  ;;  %v745_v61 = vadd.f32 %v744_v57, %v730_v32  ;;  %v710_v44 = vadd.f32 %v709_v28, %v2744_v9 }
 0x177   :  { %v2748_v1 = vpop.f32.mrf.mxu0 }
 0x178   :  { %v711_v57 = vadd.f32 %v710_v44, %v2748_v1 }
 0x179   :  { %v2750_v55 = vpop.f32.mrf.mxu0 }
 0x17a   :  { %3549 = vst [vmem:[#allocation24_spill] sm:$0xff] %v2750_v55 }
 0x17f   :  { %v2752_v29 = vpop.f32.mrf.mxu0 }
 0x180   :  { %v735_v60 = vmul.f32 %v2752_v29, %v2752_v29 }
 0x181   :  { %v2754_v15 = vpop.f32.mrf.mxu0 }
 0x182   :  { %3550 = vst [vmem:[#allocation25_spill] sm:$0xff] %v2754_v15  ;;  %v731_v15 = vmul.f32 %v2736_v56, %v2736_v56 }
 0x183   :  { %v2758_v35 = vpop.f32.mrf.mxu0 }
 0x184   :  { %v746_v20 = vadd.f32 %v745_v61, %v731_v15  ;;  %v712_v15 = vadd.f32 %v711_v57, %v2752_v29  ;;  %v736_v62 = vmul.f32 %v2758_v35, %v2758_v35 }
 0x185   :  { %v2766_v50 = vpop.f32.mrf.mxu0 }
 0x186   :  { %3551 = vst [vmem:[#allocation26_spill] sm:$0xff] %v2766_v50  ;;  %v733_v50 = vmul.f32 %v2744_v9, %v2744_v9  ;;  %v747_v13 = vadd.f32 %v746_v20, %v732_v26  ;;  %v713_v28 = vadd.f32 %v712_v15, %v2758_v35 }
 0x187   :  { %v2771_v7 = vpop.f32.mrf.mxu0 }
 0x188   :  { %v748_v32 = vadd.f32 %v747_v13, %v733_v50  ;;  %v737_v50 = vmul.f32 %v2771_v7, %v2771_v7  ;;  %v714_v43 = vadd.f32 %v713_v28, %v2771_v7 }
 0x189   :  { %v2776_v55 = vpop.f32.mrf.mxu0 }
 0x18a   :  { %3552 = vst [vmem:[#allocation27_spill] sm:$0xff] %v2776_v55  ;;  %v734_v55 = vmul.f32 %v2748_v1, %v2748_v1 }
 0x18b   :  { %v2784_v27 = vpop.f32.mrf.mxu0 }
 0x18c   :  { %v749_v10 = vadd.f32 %v748_v32, %v734_v55  ;;  %v738_v55 = vmul.f32 %v2784_v27, %v2784_v27 }
 0x18d   :  { %v2792_v61 = vpop.f32.mrf.mxu0 }
 0x18e   :  { %3553 = vst [vmem:[#allocation28_spill] sm:$0xff] %v2792_v61  ;;  %v750_v20 = vadd.f32 %v749_v10, %v735_v60  ;;  %v715_v61 = vadd.f32 %v714_v43, %v2784_v27 }
 0x190   :  { %v751_v44 = vadd.f32 %v750_v20, %v736_v62 }
 0x192   :  { %v752_v57 = vadd.f32 %v751_v44, %v737_v50 }
 0x193   :  { %v2797_v26 = vpop.f32.mrf.mxu0 }
 0x194   :  { %v739_v60 = vmul.f32 %v2797_v26, %v2797_v26  ;;  %v753_v15 = vadd.f32 %v752_v57, %v738_v55  ;;  %v716_v12 = vadd.f32 %v715_v61, %v2797_v26 }
 0x195   :  { %v2802_v13 = vpop.f32.mrf.mxu0 }
 0x196   :  { %3554 = vst [vmem:[#allocation29_spill] sm:$0xff] %v2802_v13  ;;  %v754_v28 = vadd.f32 %v753_v15, %v739_v60 }
 0x197   :  { %v2807_v32 = vpop.f32.mrf.mxu0 }
 0x198   :  { %v740_v62 = vmul.f32 %v2807_v32, %v2807_v32  ;;  %v717_v13 = vadd.f32 %v716_v12, %v2807_v32 }
 0x199   :  { %v2812_v10 = vpop.f32.mrf.mxu0 }
 0x19a   :  { %3555 = vst [vmem:[#allocation30_spill] sm:$0xff] %v2812_v10  ;;  %v755_v44 = vadd.f32 %v754_v28, %v740_v62 }
 0x19b   :  { %v2817_v20 = vpop.f32.mrf.mxu0 }
 0x19c   :  { %v741_v50 = vmul.f32 %v2817_v20, %v2817_v20  ;;  %v718_v6 = vadd.f32 %v717_v13, %v2817_v20 }
 0x19d   :  { %v2822_v43 = vpop.f32.mrf.mxu0 }
 0x19e   :  { %3556 = vst [vmem:[#allocation31_spill] sm:$0xff] %v2822_v43  ;;  %v756_v55 = vadd.f32 %v755_v44, %v741_v50 }
 0x19f   :  { %v700_v10 = vpop.f32.mrf.mxu0 }
 0x1a0   :  { %v719_v57 = vadd.f32 %v718_v6, %v700_v10  ;;  %v742_v61 = vmul.f32 %v700_v10, %v700_v10  ;;  %v2829_v6 = vsub.s32 0, %v2087_v4 }
 0x1a2   :  { %v720_v46 = vrot.slane %v719_v57, 4  ;;  %v757_v39 = vadd.f32 %v756_v55, %v742_v61 }
 0x1a4   :  { %v721_v0 = vadd.f32 %v720_v46, %v719_v57  ;;  %v758_v58 = vrot.slane %v757_v39, 4  ;;  %v767_v46 = vld [vmem:[%s3499_s4] sm:$0x1] }
 0x1a6   :  { %v722_v59 = vrot.slane %v721_v0, 2  ;;  %v759_v60 = vadd.f32 %v758_v58, %v757_v39 }
 0x1a8   :  { %v723_v15 = vadd.f32 %v722_v59, %v721_v0  ;;  %v760_v12 = vrot.slane %v759_v60, 2 }
 0x1aa   :  { %v724_v41 = vrot.slane %v723_v15, 1  ;;  %v761_v23 = vadd.f32 %v760_v12, %v759_v60 }
 0x1ac   :  { %v725_v21 = vadd.f32 %v724_v41, %v723_v15  ;;  %v762_v11 = vrot.slane %v761_v23, 1  ;;  %v771_v41 = vld [vmem:[%s3500_s5] sm:$0x1] }
 0x1ae   :  { %v726_v43 = vmul.f32 0.0078125, %v725_v21  ;;  %v763_v62 = vadd.f32 %v762_v11, %v761_v23 }
 0x1b0   :  { %v764_v28 = vmul.f32 0.0078125, %v763_v62  ;;  %v765_v13 = vmul.f32 %v726_v43, %v726_v43 }
 0x1b2   :  { %v766_v47 = vsub.f32 %v764_v28, %v765_v13 }
 0x1b4   :  { %v768_v50 = vadd.f32 1e-05, %v766_v47 }
 0x1b6   :  { %1947 = vrsqrt.f32 %v768_v50 }
 0x1c3   :  { %v1948_v59 = vpop.eup %1947 }
 0x1c4   :  { %v770_v58 = vmul.f32 %v1948_v59, %v767_v46 }
 0x1c6   :  { %v772_v21 = vmul.f32 %v770_v58, %v726_v43  ;;  %v2835_v11 = vrot.slane %v770_v58, %v2829_v6 }
 0x1c8   :  { %v773_v23 = vsub.f32 %v771_v41, %v772_v21  ;;  %v795_v47 = vmul.f32 %v2835_v11, %v700_v10  ;;  %v780_v39 = vmul.f32 %v2835_v11, %v2720_v37  ;;  %v782_v44 = vmul.f32 %v2835_v11, %v2728_v48 }
 0x1c9   :  { %v781_v55 = vmul.f32 %v2835_v11, %v2724_v36  ;;  %v783_v43 = vmul.f32 %v2835_v11, %v2732_v40  ;;  %v784_v57 = vmul.f32 %v2835_v11, %v2736_v56  ;;  %v785_v28 = vmul.f32 %v2835_v11, %v2740_v51 }
 0x1ca   :  { %v2839_v0 = vrot.slane %v773_v23, %v2829_v6 }
 0x1cc   :  { %v817_v10 = vadd.f32 %v2839_v0, %v795_v47  ;;  %v802_v61 = vadd.f32 %v2839_v0, %v780_v39  ;;  %v804_v60 = vadd.f32 %v2839_v0, %v782_v44  ;;  %v803_v37 = vadd.f32 %v2839_v0, %v781_v55 }
 0x1cd   :  { %v805_v15 = vadd.f32 %v2839_v0, %v783_v43  ;;  %v806_v48 = vadd.f32 %v2839_v0, %v784_v57  ;;  %v807_v21 = vadd.f32 %v2839_v0, %v785_v28  ;;  %v786_v39 = vmul.f32 %v2835_v11, %v2744_v9  ;;  %v976_v43 = vld [vmem:[#allocation2 + $0x170] sm:$0xff]  ;;  %v975_v9 = vld [vmem:[#allocation2 + $0x168] sm:$0xff]  ;;  %v974_v28 = vld [vmem:[#allocation2 + $0x160] sm:$0xff] }
 0x1ce   :  { %v2857_v12 = vmax.f32 %v817_v10, 0.0  ;;  %v2859_v36 = vmax.f32 %v802_v61, 0.0  ;;  %v2861_v40 = vmax.f32 %v804_v60, 0.0  ;;  %v2863_v62 = vmax.f32 %v803_v37, 0.0 }
 0x1cf   :  { %v2865_v56 = vmax.f32 %v805_v15, 0.0  ;;  %v2876_v41 = vmax.f32 %v806_v48, 0.0  ;;  %v2894_v61 = vmax.f32 %v807_v21, 0.0  ;;  %v787_v60 = vmul.f32 %v2835_v11, %v2748_v1  ;;  %v972_v21 = vld [vmem:[#allocation2 + $0x150] sm:$0xff] }
 0x1d0   :  { %v849_v13 = vrot.slane %v2857_v12, 7  ;;  %v834_v50 = vrot.slane %v2859_v36, 7  ;;  %1042 = vmatprep.mubr.f32.mxu0 %v2859_v36  ;;  %v836_v46 = vrot.slane %v2861_v40, 7  ;;  %1052 = vmatprep.mubr.f32.mxu1 %v2861_v40  ;;  %v835_v59 = vrot.slane %v2863_v62, 7 }
 0x1d1   :  { %v837_v58 = vrot.slane %v2865_v56, 7  ;;  %v838_v10 = vrot.slane %v2876_v41, 7  ;;  %v839_v48 = vrot.slane %v2894_v61, 7 }
 0x1d2   :  { %v865_v51 = vsel %vm125_vm1, %v849_v13, %v834_v50  ;;  %v863_v47 = vsel %vm125_vm1, %v835_v59, %v836_v46  ;;  %v864_v55 = vsel %vm125_vm1, %v834_v50, %v835_v59  ;;  %v809_v50 = vadd.f32 %v2839_v0, %v787_v60  ;;  %v968_v60 = vld [vmem:[#allocation2 + $0x130] sm:$0xff] }
 0x1d3   :  { %v866_v23 = vmul.f32 %v865_v51, %v2546_v42  ;;  %v868_v44 = vmul.f32 %v863_v47, %v2564_v8  ;;  %v862_v57 = vsel %vm125_vm1, %v836_v46, %v837_v58  ;;  %v808_v42 = vadd.f32 %v2839_v0, %v786_v39 }
 0x1d4   :  { %v867_v8 = vmul.f32 %v864_v55, %v2544_v38  ;;  %v869_v37 = vmul.f32 %v862_v57, %v2570_v3  ;;  %v861_v15 = vsel %vm125_vm1, %v837_v58, %v838_v10  ;;  %v973_v38 = vld [vmem:[#allocation2 + $0x158] sm:$0xff]  ;;  %v788_v3 = vmul.f32 %v2835_v11, %v2752_v29  ;;  %v971_v29 = vld [vmem:[#allocation2 + $0x148] sm:$0xff]  ;;  %v970_v55 = vld [vmem:[#allocation2 + $0x140] sm:$0xff] }
 0x1d5   :  { %1043 = vmatmul.mubr.f32.vlgmr.msra.gmra.mxu0 %v866_v23  ;;  %1053 = vmatmul.mubr.f32.vlgmr.msra.gmra.mxu1 %v868_v44  ;;  %v870_v1 = vmul.f32 %v861_v15, %v2590_v24  ;;  %v860_v46 = vsel %vm125_vm1, %v838_v10, %v839_v48  ;;  %v2917_v58 = vmax.f32 %v809_v50, 0.0  ;;  %v789_v24 = vmul.f32 %v2835_v11, %v2758_v35  ;;  %v969_v35 = vld [vmem:[#allocation2 + $0x138] sm:$0xff] }
 0x1d6   :  { %1047 = vmatprep.mubr.f32.mxu0 %v2863_v62  ;;  %1817 = vmatpush3.msra.mxu1 %v2717_v53  ;;  %v2907_v53 = vmax.f32 %v808_v42, 0.0  ;;  %v810_v51 = vadd.f32 %v2839_v0, %v788_v3  ;;  %v871_v23 = vmul.f32 %v860_v46, %v2600_v30  ;;  %v790_v30 = vmul.f32 %v2835_v11, %v2771_v7  ;;  %v967_v7 = vld [vmem:[#allocation2 + $0x128] sm:$0xff] }
 0x1d7   :  { %1057 = vmatprep.mubr.f32.mxu1 %v2865_v56  ;;  %1818 = vmatprep.subr.mxu1 %v976_v43  ;;  %v841_v39 = vrot.slane %v2917_v58, 7 }
 0x1d8   :  { %1819 = vmatpush3.msra.mxu1 %v976_v43  ;;  %v840_v59 = vrot.slane %v2907_v53, 7  ;;  %v2927_v44 = vmax.f32 %v810_v51, 0.0  ;;  %v811_v43 = vadd.f32 %v2839_v0, %v789_v24  ;;  %v964_v51 = vld [vmem:[#allocation2 + $0x110] sm:$0xff] }
 0x1d9   :  { %1048 = vmatmul.mubr.f32.gmra.mxu0 %v867_v8  ;;  %1058 = vmatmul.mubr.f32.gmra.mxu1 %v869_v37 }
 0x1da   :  { %1820 = vmatprep.subr.mxu1 %v975_v9  ;;  %1062 = vmatprep.mubr.f32.mxu1 %v2876_v41  ;;  %v859_v47 = vsel %vm125_vm1, %v839_v48, %v840_v59  ;;  %v858_v10 = vsel %vm125_vm1, %v840_v59, %v841_v39  ;;  %v842_v42 = vrot.slane %v2927_v44, 7  ;;  %v2937_v8 = vmax.f32 %v811_v43, 0.0 }
 0x1db   :  { %1821 = vmatpush3.msra.mxu1 %v975_v9  ;;  %v872_v57 = vmul.f32 %v859_v47, %v2603_v33  ;;  %v812_v9 = vadd.f32 %v2839_v0, %v790_v30  ;;  %v791_v33 = vmul.f32 %v2835_v11, %v2784_v27  ;;  %v873_v37 = vmul.f32 %v858_v10, %v2610_v52  ;;  %v965_v27 = vld [vmem:[#allocation2 + $0x118] sm:$0xff] }
 0x1dc   :  { %1822 = vmatprep.subr.mxu1 %v974_v28  ;;  %v857_v15 = vsel %vm125_vm1, %v841_v39, %v842_v42  ;;  %v843_v48 = vrot.slane %v2937_v8, 7  ;;  %v792_v52 = vmul.f32 %v2835_v11, %v2797_v26  ;;  %v793_v26 = vmul.f32 %v2835_v11, %v2807_v32 }
 0x1dd   :  { %1823 = vmatpush3.msra.mxu1 %v974_v28  ;;  %v2947_v28 = vmax.f32 %v812_v9, 0.0  ;;  %v813_v50 = vadd.f32 %v2839_v0, %v791_v33  ;;  %v874_v3 = vmul.f32 %v857_v15, %v2630_v2  ;;  %v963_v2 = vld [vmem:[#allocation2 + $0x108] sm:$0xff]  ;;  %v794_v32 = vmul.f32 %v2835_v11, %v2817_v20 }
 0x1de   :  { %1063 = vmatmul.mubr.f32.gmra.mxu1 %v870_v1  ;;  %1824 = vmatprep.subr.mxu1 %v973_v38  ;;  %v856_v1 = vsel %vm125_vm1, %v842_v42, %v843_v48  ;;  %v815_v39 = vadd.f32 %v2839_v0, %v793_v26  ;;  %v882_v33 = vrot.slane %v2859_v36, 1 }
 0x1df   :  { %1067 = vmatprep.mubr.f32.mxu1 %v2894_v61  ;;  %1825 = vmatpush3.msra.mxu1 %v973_v38  ;;  %v966_v38 = vld [vmem:[#allocation2 + $0x120] sm:$0xff]  ;;  %v844_v46 = vrot.slane %v2947_v28, 7  ;;  %v2957_v59 = vmax.f32 %v813_v50, 0.0 }
 0x1e0   :  { %1826 = vmatprep.subr.mxu1 %v972_v21  ;;  %v2977_v30 = vmax.f32 %v815_v39, 0.0  ;;  %v3560_v39 = vld [vmem:[#allocation11_spill] sm:$0xff] }
 0x1e1   :  { %1827 = vmatpush3.msra.mxu1 %v972_v21  ;;  %v814_v21 = vadd.f32 %v2839_v0, %v792_v52  ;;  %v855_v24 = vsel %vm125_vm1, %v843_v48, %v844_v46  ;;  %v888_v52 = vrot.slane %v2907_v53, 1 }
 0x1e2   :  { %1068 = vmatmul.mubr.f32.gmra.mxu1 %v871_v23  ;;  %1828 = vmatprep.subr.mxu1 %v971_v29  ;;  %v845_v23 = vrot.slane %v2957_v59, 7 }
 0x1e3   :  { %1072 = vmatprep.mubr.f32.mxu1 %v2907_v53  ;;  %1829 = vmatpush3.msra.mxu1 %v971_v29  ;;  %v875_v29 = vmul.f32 %v856_v1, %v2640_v16  ;;  %v2967_v47 = vmax.f32 %v814_v21, 0.0  ;;  %v876_v16 = vmul.f32 %v855_v24, %v2643_v17  ;;  %v847_v17 = vrot.slane %v2977_v30, 7  ;;  %v3557_v21 = vld [vmem:[#allocation8_spill] sm:$0xff] }
 0x1e4   :  { %1830 = vmatprep.subr.mxu1 %v970_v55  ;;  %v854_v43 = vsel %vm125_vm1, %v844_v46, %v845_v23  ;;  %v892_v46 = vrot.slane %v2947_v28, 1 }
 0x1e5   :  { %1831 = vmatpush3.msra.mxu1 %v970_v55  ;;  %v962_v55 = vld [vmem:[#allocation2 + $0x100] sm:$0xff]  ;;  %v877_v10 = vmul.f32 %v854_v43, %v2650_v34  ;;  %v894_v26 = vrot.slane %v2967_v47, 1 }
 0x1e6   :  { %1073 = vmatmul.mubr.f32.gmra.mxu1 %v872_v57  ;;  %1832 = vmatprep.subr.mxu1 %v969_v35  ;;  %v816_v57 = vadd.f32 %v2839_v0, %v794_v32  ;;  %v3561_v43 = vld [vmem:[#allocation12_spill] sm:$0xff] }
 0x1e7   :  { %1077 = vmatprep.mubr.f32.mxu1 %v2917_v58  ;;  %1833 = vmatpush3.msra.mxu1 %v969_v35  ;;  %v846_v35 = vrot.slane %v2967_v47, 7 }
 0x1e8   :  { %1834 = vmatprep.subr.mxu1 %v968_v60  ;;  %v2985_v11 = vmax.f32 %v816_v57, 0.0 }
 0x1e9   :  { %1835 = vmatpush3.msra.mxu1 %v968_v60  ;;  %v853_v20 = vsel %vm125_vm1, %v845_v23, %v846_v35  ;;  %v852_v0 = vsel %vm125_vm1, %v846_v35, %v847_v17 }
 0x1ea   :  { %1078 = vmatmul.mubr.f32.gmra.mxu1 %v873_v37  ;;  %1836 = vmatprep.subr.mxu1 %v967_v7  ;;  %v878_v42 = vmul.f32 %v853_v20, %v2670_v63  ;;  %v848_v9 = vrot.slane %v2985_v11, 7  ;;  %v879_v34 = vmul.f32 %v852_v0, %v2680_v18  ;;  %v884_v37 = vrot.slane %v2861_v40, 1 }
 0x1eb   :  { %1082 = vmatprep.mubr.f32.mxu1 %v2927_v44  ;;  %1837 = vmatpush3.msra.mxu1 %v967_v7  ;;  %v883_v7 = vrot.slane %v2863_v62, 1  ;;  %v885_v18 = vrot.slane %v2865_v56, 1  ;;  %v896_v23 = vrot.slane %v2985_v11, 1 }
 0x1ec   :  { %1838 = vmatprep.subr.mxu1 %v966_v38  ;;  %v851_v60 = vsel %vm125_vm1, %v847_v17, %v848_v9  ;;  %v850_v15 = vsel %vm125_vm1, %v848_v9, %v849_v13  ;;  %v887_v13 = vrot.slane %v2894_v61, 1  ;;  %v3563_v17 = vld [vmem:[#allocation14_spill] sm:$0xff]  ;;  %v3565_v9 = vld [vmem:[#allocation16_spill] sm:$0xff] }
 0x1ed   :  { %1839 = vmatpush3.msra.mxu1 %v966_v38  ;;  %v880_v63 = vmul.f32 %v851_v60, %v2683_v49  ;;  %v912_v48 = vsel %vm254_vm0, %v882_v33, %v883_v7  ;;  %v881_v62 = vmul.f32 %v850_v15, %v2690_v25  ;;  %v886_v49 = vrot.slane %v2876_v41, 1 }
 0x1ee   :  { %1083 = vmatmul.mubr.f32.gmra.mxu1 %v874_v3  ;;  %1840 = vmatprep.subr.mxu1 %v965_v27  ;;  %v914_v40 = vmul.f32 %v912_v48, %v2556_v14  ;;  %v911_v50 = vsel %vm254_vm0, %v883_v7, %v884_v37  ;;  %v910_v56 = vsel %vm254_vm0, %v884_v37, %v885_v18  ;;  %v889_v14 = vrot.slane %v2917_v58, 1 }
 0x1ef   :  { %1087 = vmatprep.mubr.f32.mxu1 %v2937_v8  ;;  %1841 = vmatpush3.msra.mxu1 %v965_v27  ;;  %v915_v38 = vmul.f32 %v911_v50, %v2554_v45  ;;  %v916_v25 = vmul.f32 %v910_v56, %v2572_v5  ;;  %v909_v41 = vsel %vm254_vm0, %v885_v18, %v886_v49  ;;  %v890_v3 = vrot.slane %v2927_v44, 1 }
 0x1f0   :  { %1842 = vmatprep.subr.mxu1 %v964_v51  ;;  %v908_v61 = vsel %vm254_vm0, %v886_v49, %v887_v13  ;;  %v917_v27 = vmul.f32 %v909_v41, %v2580_v19  ;;  %v907_v53 = vsel %vm254_vm0, %v887_v13, %v888_v52  ;;  %v891_v5 = vrot.slane %v2937_v8, 1  ;;  %v3566_v41 = vld [vmem:[#allocation17_spill] sm:$0xff] }
 0x1f1   :  { %1843 = vmatpush3.msra.mxu1 %v964_v51  ;;  %v918_v45 = vmul.f32 %v908_v61, %v2588_v22  ;;  %v906_v58 = vsel %vm254_vm0, %v888_v52, %v889_v14  ;;  %v919_v1 = vmul.f32 %v907_v53, %v2598_v31  ;;  %v905_v44 = vsel %vm254_vm0, %v889_v14, %v890_v3  ;;  %v3567_v14 = vld [vmem:[#allocation18_spill] sm:$0xff]  ;;  %v3568_v53 = vld [vmem:[#allocation19_spill] sm:$0xff] }
 0x1f2   :  { %1088 = vmatmul.mubr.f32.gmra.mxu1 %v875_v29  ;;  %1844 = vmatprep.subr.mxu1 %v963_v2  ;;  %v920_v19 = vmul.f32 %v906_v58, %v2612_v54  ;;  %v893_v22 = vrot.slane %v2957_v59, 1  ;;  %v904_v8 = vsel %vm254_vm0, %v890_v3, %v891_v5  ;;  %v921_v51 = vmul.f32 %v905_v44, %v3557_v21  ;;  %v3559_v29 = vld [vmem:[#allocation10_spill] sm:$0xff]  ;;  %v3569_v44 = vld [vmem:[#allocation20_spill] sm:$0xff] }
 0x1f3   :  { %1092 = vmatprep.mubr.f32.mxu1 %v2947_v28  ;;  %1845 = vmatpush3.msra.mxu1 %v963_v2  ;;  %v3558_v2 = vld [vmem:[#allocation9_spill] sm:$0xff]  ;;  %v903_v28 = vsel %vm254_vm0, %v891_v5, %v892_v46  ;;  %v895_v54 = vrot.slane %v2977_v30, 1  ;;  %v1397_v61 = vadd.f32 %v3567_v14, %v3566_v41  ;;  %v1421_v58 = vmul.f32 %v3568_v53, %v3568_v53 }
 0x1f4   :  { %1846 = vmatprep.subr.mxu1 %v962_v55  ;;  %v922_v31 = vmul.f32 %v904_v8, %v3558_v2  ;;  %v923_v24 = vmul.f32 %v903_v28, %v3559_v29  ;;  %v1422_v8 = vmul.f32 %v3569_v44, %v3569_v44  ;;  %v3570_v2 = vld [vmem:[#allocation21_spill] sm:$0xff]  ;;  %v3571_v29 = vld [vmem:[#allocation22_spill] sm:$0xff] }
 0x1f5   :  { %1847 = vmatpush3.msra.mxu1 %v962_v55  ;;  %v900_v32 = vsel %vm254_vm0, %v894_v26, %v895_v54  ;;  %v1398_v5 = vadd.f32 %v1397_v61, %v3568_v53  ;;  %v1423_v28 = vmul.f32 %v3570_v2, %v3570_v2 }
 0x1f6   :  { %1093 = vmatmul.mubr.f32.gmra.mxu1 %v876_v16  ;;  %v897_v16 = vrot.slane %v2857_v12, 1 }
 0x1f7   :  { %1097 = vmatprep.mubr.f32.mxu1 %v2957_v59  ;;  %v902_v59 = vsel %vm254_vm0, %v892_v46, %v893_v22 }
 0x1f8   :  { %v924_v55 = vmul.f32 %v902_v59, %v3560_v39  ;;  %v898_v20 = vsel %vm254_vm0, %v896_v23, %v897_v16 }
 0x1fa   :  { %1098 = vmatmul.mubr.f32.gmra.mxu1 %v877_v10  ;;  %v899_v10 = vsel %vm254_vm0, %v895_v54, %v896_v23  ;;  %v1424_v23 = vmul.f32 %v3571_v29, %v3571_v29 }
 0x1fb   :  { %1102 = vmatprep.mubr.f32.mxu1 %v2967_v47  ;;  %v901_v47 = vsel %vm254_vm0, %v893_v22, %v894_v26  ;;  %v1399_v22 = vadd.f32 %v1398_v5, %v3569_v44 }
 0x1fc   :  { %v925_v35 = vmul.f32 %v901_v47, %v3561_v43 }
 0x1fe   :  { %1103 = vmatmul.mubr.f32.gmra.mxu1 %v878_v42  ;;  %v3564_v42 = vld [vmem:[#allocation15_spill] sm:$0xff] }
 0x1ff   :  { %1107 = vmatprep.mubr.f32.mxu1 %v2977_v30  ;;  %v3562_v30 = vld [vmem:[#allocation13_spill] sm:$0xff]  ;;  %v928_v0 = vmul.f32 %v898_v20, %v3564_v42 }
 0x200   :  { %v926_v57 = vmul.f32 %v900_v32, %v3562_v30  ;;  %v3572_v32 = vld [vmem:[#allocation23_spill] sm:$0xff] }
 0x201   :  { %v1425_v43 = vmul.f32 %v3572_v32, %v3572_v32 }
 0x202   :  { %1108 = vmatmul.mubr.f32.gmra.mxu1 %v879_v34 }
 0x203   :  { %1112 = vmatprep.mubr.f32.mxu1 %v2985_v11  ;;  %v927_v11 = vmul.f32 %v899_v10, %v3563_v17 }
 0x206   :  { %1113 = vmatmul.mubr.f32.gmra.mxu1 %v880_v63 }
 0x207   :  { %1117 = vmatprep.mubr.f32.mxu1 %v2857_v12  ;;  %v913_v12 = vsel %vm254_vm0, %v897_v16, %v882_v33 }
 0x208   :  { %v929_v34 = vmul.f32 %v913_v12, %v3565_v9 }
 0x20a   :  { %1118 = vmatmul.mubr.f32.gmra.mxu1 %v881_v62 }
 0x20b   :  { %1848 = vmatprep.mubr.f32.mxu1 %v914_v40 }
 0x20e   :  { %1849 = vmatmul.mubr.f32.vlgmr.msra.gmra.mxu1 %v915_v38 }
 0x20f   :  { %1851 = vmatprep.mubr.f32.mxu1 %v916_v25 }
 0x212   :  { %1852 = vmatmul.mubr.f32.gmra.mxu1 %v917_v27  ;;  %v1420_v27 = vmul.f32 %v3567_v14, %v3567_v14 }
 0x213   :  { %1854 = vmatprep.mubr.f32.mxu1 %v918_v45  ;;  %v1419_v45 = vmul.f32 %v3566_v41, %v3566_v41 }
 0x216   :  { %1855 = vmatmul.mubr.f32.gmra.mxu1 %v919_v1  ;;  %v3121_v1 = vpop.f32.mrf.mxu0 }
 0x217   :  { %1857 = vmatprep.mubr.f32.mxu1 %v920_v19  ;;  %v1435_v19 = vadd.f32 %v1420_v27, %v1419_v45  ;;  %v3575_v27 = vld [vmem:[#allocation26_spill] sm:$0xff] }
 0x218   :  { %v1428_v5 = vmul.f32 %v3575_v27, %v3575_v27 }
 0x219   :  { %v1436_v26 = vadd.f32 %v1435_v19, %v1421_v58 }
 0x21a   :  { %1858 = vmatmul.mubr.f32.gmra.mxu1 %v921_v51 }
 0x21b   :  { %1860 = vmatprep.mubr.f32.mxu1 %v922_v31  ;;  %v1400_v31 = vadd.f32 %v1399_v22, %v3570_v2  ;;  %v1437_v59 = vadd.f32 %v1436_v26, %v1422_v8  ;;  %v3576_v8 = vld [vmem:[#allocation27_spill] sm:$0xff] }
 0x21d   :  { %v1438_v47 = vadd.f32 %v1437_v59, %v1423_v28 }
 0x21e   :  { %1861 = vmatmul.mubr.f32.gmra.mxu1 %v923_v24  ;;  %v1401_v24 = vadd.f32 %v1400_v31, %v3571_v29  ;;  %v1429_v31 = vmul.f32 %v3576_v8, %v3576_v8 }
 0x21f   :  { %1863 = vmatprep.mubr.f32.mxu1 %v924_v55  ;;  %v1439_v30 = vadd.f32 %v1438_v47, %v1424_v23  ;;  %v3577_v47 = vld [vmem:[#allocation28_spill] sm:$0xff] }
 0x220   :  { %v1402_v16 = vadd.f32 %v1401_v24, %v3572_v32 }
 0x221   :  { %v1440_v42 = vadd.f32 %v1439_v30, %v1425_v43  ;;  %v1430_v43 = vmul.f32 %v3577_v47, %v3577_v47 }
 0x222   :  { %1864 = vmatmul.mubr.f32.gmra.mxu1 %v925_v35 }
 0x223   :  { %1866 = vmatprep.mubr.f32.mxu1 %v926_v57  ;;  %v3573_v57 = vld [vmem:[#allocation24_spill] sm:$0xff] }
 0x224   :  { %v1403_v10 = vadd.f32 %v1402_v16, %v3573_v57  ;;  %v1426_v20 = vmul.f32 %v3573_v57, %v3573_v57 }
 0x226   :  { %1867 = vmatmul.mubr.f32.gmra.mxu1 %v927_v11  ;;  %v1441_v61 = vadd.f32 %v1440_v42, %v1426_v20 }
 0x227   :  { %1869 = vmatprep.mubr.f32.mxu1 %v928_v0  ;;  %v3574_v0 = vld [vmem:[#allocation25_spill] sm:$0xff] }
 0x228   :  { %v1404_v12 = vadd.f32 %v1403_v10, %v3574_v0  ;;  %v1427_v9 = vmul.f32 %v3574_v0, %v3574_v0 }
 0x22a   :  { %1870 = vmatmul.mubr.f32.gmra.mxu1 %v929_v34  ;;  %v1405_v45 = vadd.f32 %v1404_v12, %v3575_v27  ;;  %v1442_v22 = vadd.f32 %v1441_v61, %v1427_v9  ;;  %v3578_v12 = vld [vmem:[#allocation29_spill] sm:$0xff] }
 0x22b   :  { %v1431_v61 = vmul.f32 %v3578_v12, %v3578_v12 }
 0x22c   :  { %v1406_v26 = vadd.f32 %v1405_v45, %v3576_v8  ;;  %v1443_v23 = vadd.f32 %v1442_v22, %v1428_v5 }
 0x22e   :  { %v1407_v16 = vadd.f32 %v1406_v26, %v3577_v47  ;;  %v1444_v42 = vadd.f32 %v1443_v23, %v1429_v31 }
 0x230   :  { %v1408_v9 = vadd.f32 %v1407_v16, %v3578_v12  ;;  %v1445_v5 = vadd.f32 %v1444_v42, %v1430_v43 }
 0x295   :  { %v3072_v60 = vpop.f32.mrf.mxu1  ;;  %v1736_v21 = vpop.f32.mrf.mxu0 }
 0x297   :  { %v3074_v7 = vpop.f32.mrf.mxu1  ;;  %v1737_v39 = vpop.f32.mrf.mxu0 }
 0x298   :  { %v1738_v59 = vadd.f32 %v1737_v39, %v1736_v21  ;;  %v1744_v21 = vadd.f32 %v3074_v7, %v3072_v60 }
 0x299   :  { %v3076_v63 = vpop.f32.mrf.mxu1  ;;  %v1739_v17 = vpop.f32.mrf.mxu0 }
 0x29b   :  { %v3078_v37 = vpop.f32.mrf.mxu1  ;;  %v1740_v58 = vpop.f32.mrf.mxu0 }
 0x29c   :  { %v1741_v24 = vadd.f32 %v1740_v58, %v1739_v17  ;;  %v1747_v39 = vadd.f32 %v3078_v37, %v3076_v63  ;;  %v3579_v58 = vld [vmem:[#allocation30_spill] sm:$0xff]  ;;  %v1446_v63 = vadd.f32 %v1445_v5, %v1431_v61  ;;  %v3580_v37 = vld [vmem:[#allocation31_spill] sm:$0xff] }
 0x29d   :  { %v1409_v22 = vadd.f32 %v1408_v9, %v3579_v58  ;;  %v1432_v26 = vmul.f32 %v3579_v58, %v3579_v58  ;;  %v1433_v23 = vmul.f32 %v3580_v37, %v3580_v37 }
 0x29e   :  { %v3080_v15 = vpop.f32.mrf.mxu1 }
 0x2a0   :  { %v3082_v18 = vpop.f32.mrf.mxu1 }
 0x2a2   :  { %v3084_v36 = vpop.f32.mrf.mxu1 }
 0x2a4   :  { %v3086_v4 = vpop.f32.mrf.mxu1 }
 0x2a5   :  { %v1753_v16 = vadd.f32 %v3086_v4, %v3084_v36 }
 0x2a6   :  { %v3088_v33 = vpop.f32.mrf.mxu1 }
 0x2a8   :  { %v3090_v48 = vpop.f32.mrf.mxu1 }
 0x2aa   :  { %v3092_v62 = vpop.f32.mrf.mxu1 }
 0x2ac   :  { %v3094_v49 = vpop.f32.mrf.mxu1 }
 0x2ae   :  { %v3096_v40 = vpop.f32.mrf.mxu1 }
 0x2b0   :  { %v3098_v50 = vpop.f32.mrf.mxu1 }
 0x2b2   :  { %v3100_v13 = vpop.f32.mrf.mxu1 }
 0x2b4   :  { %v3102_v56 = vpop.f32.mrf.mxu1 }
 0x2b6   :  { %v3104_v38 = vpop.f32.mrf.mxu1 }
 0x2b8   :  { %v3106_v52 = vpop.f32.mrf.mxu1 }
 0x2ba   :  { %v3108_v25 = vpop.f32.mrf.mxu1 }
 0x2bc   :  { %v3114_v3 = vpop.f32.mrf.mxu1 }
 0x2be   :  { %v3123_v46 = vpop.f32.mrf.mxu1 }
 0x2c0   :  { %v3128_v51 = vpop.f32.mrf.mxu1 }
 0x2c2   :  { %v3133_v54 = vpop.f32.mrf.mxu1 }
 0x2c4   :  { %v3138_v55 = vpop.f32.mrf.mxu1 }
 0x2c6   :  { %v3143_v35 = vpop.f32.mrf.mxu1 }
 0x2c8   :  { %v3148_v11 = vpop.f32.mrf.mxu1 }
 0x2ca   :  { %v3153_v34 = vpop.f32.mrf.mxu1 }
 0x2cc   :  { %v3158_v19 = vpop.f32.mrf.mxu1 }
 0x2ce   :  { %v1850_v28 = vpop.f32.mrf.mxu1 }
 0x2cf   :  { %v3166_v10 = vadd.f32 %v1850_v28, %v1741_v24  ;;  %v1410_v24 = vadd.f32 %v1409_v22, %v3580_v37 }
 0x2d0   :  { %v1189_v30 = vpop.f32.mrf.mxu1 }
 0x2d1   :  { %v3168_v20 = vadd.f32 %v1738_v59, %v1189_v30  ;;  %v1291_v28 = vmul.f32 %v3166_v10, %v3166_v10  ;;  %v1750_v30 = vadd.f32 %v3082_v18, %v3080_v15  ;;  %v1411_v61 = vadd.f32 %v1410_v24, %v3121_v1 }
 0x2d2   :  { %v1853_v45 = vpop.f32.mrf.mxu1 }
 0x2d3   :  { %v1290_v17 = vmul.f32 %v3168_v20, %v3168_v20  ;;  %v1268_v59 = vadd.f32 %v3166_v10, %v3168_v20  ;;  %v3186_v60 = vadd.f32 %v1853_v45, %v1747_v39  ;;  %v1434_v39 = vmul.f32 %v3121_v1, %v3121_v1 }
 0x2d4   :  { %v1199_v31 = vpop.f32.mrf.mxu1 }
 0x2d5   :  { %v3188_v7 = vadd.f32 %v1744_v21, %v1199_v31  ;;  %v1306_v42 = vadd.f32 %v1291_v28, %v1290_v17  ;;  %v1447_v21 = vadd.f32 %v1446_v63, %v1432_v26  ;;  %v1293_v36 = vmul.f32 %v3186_v60, %v3186_v60 }
 0x2d6   :  { %v1856_v43 = vpop.f32.mrf.mxu1  ;;  %v1756_v26 = vadd.f32 %v3090_v48, %v3088_v33  ;;  %v1759_v28 = vadd.f32 %v3094_v49, %v3092_v62  ;;  %v1765_v62 = vadd.f32 %v3102_v56, %v3100_v13 }
 0x2d7   :  { %v1269_v9 = vadd.f32 %v1268_v59, %v3188_v7  ;;  %v1292_v45 = vmul.f32 %v3188_v7, %v3188_v7  ;;  %v3203_v5 = vadd.f32 %v1856_v43, %v1753_v16  ;;  %v1448_v17 = vadd.f32 %v1447_v21, %v1433_v23 }
 0x2d8   :  { %v1209_v22 = vpop.f32.mrf.mxu1  ;;  %v1412_v16 = vrot.slane %v1411_v61, 4 }
 0x2d9   :  { %v1307_v4 = vadd.f32 %v1306_v42, %v1292_v45  ;;  %v3207_v15 = vadd.f32 %v1750_v30, %v1209_v22  ;;  %v1270_v18 = vadd.f32 %v1269_v9, %v3186_v60  ;;  %v1449_v43 = vadd.f32 %v1448_v17, %v1434_v39 }
 0x2da   :  { %v1859_v31 = vpop.f32.mrf.mxu1  ;;  %v1295_v30 = vmul.f32 %v3203_v5, %v3203_v5  ;;  %v1762_v45 = vadd.f32 %v3098_v50, %v3096_v40  ;;  %v1768_v40 = vadd.f32 %v3106_v52, %v3104_v38 }
 0x2db   :  { %v1271_v59 = vadd.f32 %v1270_v18, %v3207_v15  ;;  %v1294_v63 = vmul.f32 %v3207_v15, %v3207_v15  ;;  %v1308_v24 = vadd.f32 %v1307_v4, %v1293_v36  ;;  %v3219_v9 = vadd.f32 %v1859_v31, %v1759_v28 }
 0x2dc   :  { %v1219_v42 = vpop.f32.mrf.mxu1  ;;  %v1413_v36 = vadd.f32 %v1412_v16, %v1411_v61  ;;  %v1450_v4 = vrot.slane %v1449_v43, 4  ;;  %v1771_v28 = vadd.f32 %v3114_v3, %v3108_v25  ;;  %v1777_v25 = vadd.f32 %v3138_v55, %v3133_v54 }
 0x2dd   :  { %v1309_v23 = vadd.f32 %v1308_v24, %v1294_v63  ;;  %v3221_v33 = vadd.f32 %v1756_v26, %v1219_v42  ;;  %v1272_v48 = vadd.f32 %v1271_v59, %v3203_v5  ;;  %v1297_v26 = vmul.f32 %v3219_v9, %v3219_v9 }
 0x2de   :  { %v1862_v49 = vpop.f32.mrf.mxu1  ;;  %v1414_v24 = vrot.slane %v1413_v36, 2  ;;  %v1451_v16 = vadd.f32 %v1450_v4, %v1449_v43 }
 0x2df   :  { %v1273_v21 = vadd.f32 %v1272_v48, %v3221_v33  ;;  %v1296_v39 = vmul.f32 %v3221_v33, %v3221_v33  ;;  %v1310_v22 = vadd.f32 %v1309_v23, %v1295_v30  ;;  %v3231_v18 = vadd.f32 %v1862_v49, %v1765_v62 }
 0x2e0   :  { %v1229_v17 = vpop.f32.mrf.mxu1  ;;  %v1774_v62 = vadd.f32 %v3128_v51, %v3123_v46  ;;  %v1780_v46 = vadd.f32 %v3148_v11, %v3143_v35 }
 0x2e1   :  { %v1311_v31 = vadd.f32 %v1310_v22, %v1296_v39  ;;  %v3235_v13 = vadd.f32 %v1762_v45, %v1229_v17  ;;  %v1274_v56 = vadd.f32 %v1273_v21, %v3219_v9  ;;  %v1299_v30 = vmul.f32 %v3231_v18, %v3231_v18 }
 0x2e2   :  { %v1865_v50 = vpop.f32.mrf.mxu1  ;;  %v1415_v21 = vadd.f32 %v1414_v24, %v1413_v36  ;;  %v1452_v39 = vrot.slane %v1451_v16, 2 }
 0x2e3   :  { %v1275_v61 = vadd.f32 %v1274_v56, %v3235_v13  ;;  %v1298_v59 = vmul.f32 %v3235_v13, %v3235_v13  ;;  %v1312_v63 = vadd.f32 %v1311_v31, %v1297_v26  ;;  %v3247_v48 = vadd.f32 %v1865_v50, %v1771_v28 }
 0x2e4   :  { %v1239_v42 = vpop.f32.mrf.mxu1  ;;  %v1783_v31 = vadd.f32 %v3158_v19, %v3153_v34  ;;  %v1416_v50 = vrot.slane %v1415_v21, 1  ;;  %v1453_v28 = vadd.f32 %v1452_v39, %v1451_v16 }
 0x2e5   :  { %v1313_v23 = vadd.f32 %v1312_v63, %v1298_v59  ;;  %v3249_v38 = vadd.f32 %v1768_v40, %v1239_v42  ;;  %v1276_v52 = vadd.f32 %v1275_v61, %v3231_v18  ;;  %v1301_v17 = vmul.f32 %v3247_v48, %v3247_v48 }
 0x2e6   :  { %v1868_v3 = vpop.f32.mrf.mxu1  ;;  %v1417_v42 = vadd.f32 %v1416_v50, %v1415_v21 }
 0x2e7   :  { %v1277_v43 = vadd.f32 %v1276_v52, %v3249_v38  ;;  %v1300_v49 = vmul.f32 %v3249_v38, %v3249_v38  ;;  %v1314_v45 = vadd.f32 %v1313_v23, %v1299_v30  ;;  %v3259_v22 = vadd.f32 %v1868_v3, %v1777_v25 }
 0x2e8   :  { %v1249_v4 = vpop.f32.mrf.mxu1  ;;  %v1454_v23 = vrot.slane %v1453_v28, 1 }
 0x2e9   :  { %v1315_v26 = vadd.f32 %v1314_v45, %v1300_v49  ;;  %v3263_v54 = vadd.f32 %v1774_v62, %v1249_v4  ;;  %v1278_v55 = vadd.f32 %v1277_v43, %v3247_v48  ;;  %v1303_v61 = vmul.f32 %v3259_v22, %v3259_v22 }
 0x2ea   :  { %v1871_v51 = vpop.f32.mrf.mxu1  ;;  %v1418_v43 = vmul.f32 0.0078125, %v1417_v42  ;;  %v1455_v49 = vadd.f32 %v1454_v23, %v1453_v28  ;;  %v1330_v42 = vld [vmem:[%s3502_s7] sm:$0x1] }
 0x2eb   :  { %v1279_v36 = vadd.f32 %v1278_v55, %v3263_v54  ;;  %v1302_v56 = vmul.f32 %v3263_v54, %v3263_v54  ;;  %v1316_v40 = vadd.f32 %v1315_v26, %v1301_v17  ;;  %v3275_v24 = vadd.f32 %v1871_v51, %v1783_v31 }
 0x2ec   :  { %v1259_v59 = vpop.f32.mrf.mxu1  ;;  %v1456_v26 = vmul.f32 0.0078125, %v1455_v49  ;;  %v1457_v55 = vmul.f32 %v1418_v43, %v1418_v43 }
 0x2ed   :  { %v1317_v63 = vadd.f32 %v1316_v40, %v1302_v56  ;;  %v3277_v35 = vadd.f32 %v1780_v46, %v1259_v59  ;;  %v1280_v11 = vadd.f32 %v1279_v36, %v3259_v22  ;;  %v1305_v16 = vmul.f32 %v3275_v24, %v3275_v24 }
 0x2ee   :  { %v1458_v36 = vsub.f32 %v1456_v26, %v1457_v55 }
 0x2ef   :  { %v1281_v34 = vadd.f32 %v1280_v11, %v3277_v35  ;;  %v1304_v19 = vmul.f32 %v3277_v35, %v3277_v35  ;;  %v1318_v30 = vadd.f32 %v1317_v63, %v1303_v61 }
 0x2f0   :  { %v1460_v59 = vadd.f32 1e-05, %v1458_v36 }
 0x2f1   :  { %v1282_v52 = vadd.f32 %v1281_v34, %v3275_v24  ;;  %v1319_v25 = vadd.f32 %v1318_v30, %v1304_v19  ;;  %v1459_v30 = vld [vmem:[%s3504_s9] sm:$0x1] }
 0x2f2   :  { %1949 = vrsqrt.f32 %v1460_v59 }
 0x2f3   :  { %v1283_v3 = vrot.slane %v1282_v52, 4  ;;  %v1320_v62 = vadd.f32 %v1319_v25, %v1305_v16  ;;  %v1334_v25 = vld [vmem:[%s3503_s8] sm:$0x1] }
 0x2f5   :  { %v1284_v45 = vadd.f32 %v1283_v3, %v1282_v52  ;;  %v1321_v39 = vrot.slane %v1320_v62, 4 }
 0x2f7   :  { %v1285_v4 = vrot.slane %v1284_v45, 2  ;;  %v1322_v17 = vadd.f32 %v1321_v39, %v1320_v62  ;;  %v1463_v39 = vld [vmem:[%s3505_s10] sm:$0x1] }
 0x2f9   :  { %v1286_v46 = vadd.f32 %v1285_v4, %v1284_v45  ;;  %v1323_v51 = vrot.slane %v1322_v17, 2 }
 0x2fb   :  { %v1287_v21 = vrot.slane %v1286_v46, 1  ;;  %v1324_v31 = vadd.f32 %v1323_v51, %v1322_v17 }
 0x2fd   :  { %v1288_v56 = vadd.f32 %v1287_v21, %v1286_v46  ;;  %v1325_v40 = vrot.slane %v1324_v31, 1 }
 0x2ff   :  { %v1289_v50 = vmul.f32 0.0078125, %v1288_v56  ;;  %v1326_v61 = vadd.f32 %v1325_v40, %v1324_v31  ;;  %v1950_v19 = vpop.eup %1949 }
 0x300   :  { %v1462_v16 = vmul.f32 %v1950_v19, %v1459_v30 }
 0x301   :  { %v1327_v63 = vmul.f32 0.0078125, %v1326_v61  ;;  %v1328_v11 = vmul.f32 %v1289_v50, %v1289_v50 }
 0x302   :  { %v1464_v62 = vmul.f32 %v1462_v16, %v1418_v43  ;;  %v3309_v43 = vrot.slane %v1462_v16, %v2829_v6 }
 0x303   :  { %v1329_v34 = vsub.f32 %v1327_v63, %v1328_v11 }
 0x304   :  { %v1465_v4 = vsub.f32 %v1463_v39, %v1464_v62  ;;  %v1474_v59 = vmul.f32 %v3309_v43, %v3568_v53  ;;  %v1476_v11 = vmul.f32 %v3309_v43, %v3570_v2  ;;  %v1478_v53 = vmul.f32 %v3309_v43, %v3572_v32 }
 0x305   :  { %v1331_v28 = vadd.f32 1e-05, %v1329_v34  ;;  %v1479_v2 = vmul.f32 %v3309_v43, %v3573_v57  ;;  %v1481_v32 = vmul.f32 %v3309_v43, %v3575_v27  ;;  %v3378_v39 = vmul.f32 %v3309_v43, %v3578_v12 }
 0x306   :  { %v3314_v21 = vrot.slane %v1465_v4, %v2829_v6 }
 0x307   :  { %1951 = vrsqrt.f32 %v1331_v28 }
 0x308   :  { %v1496_v16 = vadd.f32 %v3314_v21, %v1474_v59 }
 0x314   :  { %v1952_v23 = vpop.eup %1951 }
 0x315   :  { %v1333_v52 = vmul.f32 %v1952_v23, %v1330_v42  ;;  %v1482_v23 = vmul.f32 %v3309_v43, %v3576_v8 }
 0x317   :  { %v1335_v3 = vmul.f32 %v1333_v52, %v1289_v50  ;;  %v3296_v45 = vrot.slane %v1333_v52, %v2829_v6 }
 0x319   :  { %v1336_v49 = vsub.f32 %v1334_v25, %v1335_v3  ;;  %v1343_v17 = vmul.f32 %v3296_v45, %v3168_v20  ;;  %v1344_v26 = vmul.f32 %v3296_v45, %v3166_v10  ;;  %v1345_v31 = vmul.f32 %v3296_v45, %v3188_v7 }
 0x31a   :  { %v1472_v20 = vmul.f32 %v3309_v43, %v3566_v41  ;;  %v1473_v10 = vmul.f32 %v3309_v43, %v3567_v14  ;;  %v1346_v36 = vmul.f32 %v3296_v45, %v3186_v60  ;;  %v1347_v61 = vmul.f32 %v3296_v45, %v3207_v15 }
 0x31b   :  { %v3306_v55 = vrot.slane %v1336_v49, %v2829_v6  ;;  %v1475_v41 = vmul.f32 %v3309_v43, %v3569_v44  ;;  %v1477_v15 = vmul.f32 %v3309_v43, %v3571_v29  ;;  %v1348_v34 = vmul.f32 %v3296_v45, %v3203_v5 }
 0x31c   :  { %v1494_v14 = vadd.f32 %v3314_v21, %v1472_v20  ;;  %v1495_v63 = vadd.f32 %v3314_v21, %v1473_v10  ;;  %v1349_v30 = vmul.f32 %v3296_v45, %v3221_v33  ;;  %v1480_v29 = vmul.f32 %v3309_v43, %v3574_v0 }
 0x31d   :  { %v1365_v46 = vadd.f32 %v3306_v55, %v1343_v17  ;;  %v1366_v51 = vadd.f32 %v3306_v55, %v1344_v26  ;;  %v1367_v56 = vadd.f32 %v3306_v55, %v1345_v31  ;;  %v1368_v7 = vadd.f32 %v3306_v55, %v1346_v36 }
 0x31e   :  { %v1369_v60 = vadd.f32 %v3306_v55, %v1347_v61  ;;  %v1370_v42 = vadd.f32 %v3306_v55, %v1348_v34  ;;  %v1350_v33 = vmul.f32 %v3296_v45, %v3219_v9  ;;  %v1371_v52 = vadd.f32 %v3306_v55, %v1349_v30 }
 0x31f   :  { %v1381_v40 = vmax.f32 %v1365_v46, 0.0  ;;  %v1382_v50 = vmax.f32 %v1366_v51, 0.0  ;;  %v1383_v28 = vmax.f32 %v1367_v56, 0.0  ;;  %v1384_v5 = vmax.f32 %v1368_v7, 0.0 }
 0x320   :  { %v1385_v57 = vmax.f32 %v1369_v60, 0.0  ;;  %v1497_v25 = vadd.f32 %v3314_v21, %v1475_v41  ;;  %v1351_v62 = vmul.f32 %v3296_v45, %v3235_v13  ;;  %v1372_v9 = vadd.f32 %v3306_v55, %v1350_v33 }
 0x321   :  { %v3343_v44 = vadd.f32 %v1494_v14, %v1381_v40  ;;  %v3345_v19 = vadd.f32 %v1495_v63, %v1382_v50  ;;  %v3363_v0 = vadd.f32 %v1496_v16, %v1383_v28  ;;  %v1483_v49 = vmul.f32 %v3309_v43, %v3577_v47 }
 0x322   :  { %v1386_v4 = vmax.f32 %v1370_v42, 0.0  ;;  %v1498_v17 = vadd.f32 %v3314_v21, %v1476_v11  ;;  %v3381_v26 = vadd.f32 %v1497_v25, %v1384_v5  ;;  %v1352_v51 = vmul.f32 %v3296_v45, %v3231_v18 }
 0x323   :  { %v1526_v27 = vadd.f32 %v3345_v19, %v3343_v44  ;;  %v1548_v3 = vmul.f32 %v3343_v44, %v3343_v44  ;;  %v1549_v8 = vmul.f32 %v3345_v19, %v3345_v19  ;;  %v1373_v13 = vadd.f32 %v3306_v55, %v1351_v62 }
 0x324   :  { %v1387_v31 = vmax.f32 %v1371_v52, 0.0  ;;  %v1499_v20 = vadd.f32 %v3314_v21, %v1477_v15  ;;  %v3388_v47 = vadd.f32 %v1498_v17, %v1385_v57  ;;  %v1550_v10 = vmul.f32 %v3363_v0, %v3363_v0 }
 0x325   :  { %v1527_v46 = vadd.f32 %v1526_v27, %v3363_v0  ;;  %v1564_v36 = vadd.f32 %v1549_v8, %v1548_v3  ;;  %v1353_v56 = vmul.f32 %v3296_v45, %v3249_v38  ;;  %v1374_v40 = vadd.f32 %v3306_v55, %v1352_v51 }
 0x326   :  { %v1388_v50 = vmax.f32 %v1372_v9, 0.0  ;;  %v1500_v18 = vadd.f32 %v3314_v21, %v1478_v53  ;;  %v3397_v61 = vadd.f32 %v1499_v20, %v1386_v4  ;;  %v1551_v7 = vmul.f32 %v3381_v26, %v3381_v26 }
 0x327   :  { %v1528_v12 = vadd.f32 %v1527_v46, %v3381_v26  ;;  %v1565_v41 = vadd.f32 %v1564_v36, %v1550_v10  ;;  %v1354_v14 = vmul.f32 %v3296_v45, %v3247_v48  ;;  %v1375_v63 = vadd.f32 %v3306_v55, %v1353_v56 }
 0x328   :  { %v1389_v60 = vmax.f32 %v1373_v13, 0.0  ;;  %v1501_v38 = vadd.f32 %v3314_v21, %v1479_v2  ;;  %v3406_v11 = vadd.f32 %v1500_v18, %v1387_v31  ;;  %v1552_v53 = vmul.f32 %v3388_v47, %v3388_v47 }
 0x329   :  { %v1529_v59 = vadd.f32 %v1528_v12, %v3388_v47  ;;  %v1566_v34 = vadd.f32 %v1565_v41, %v1551_v7  ;;  %v1355_v28 = vmul.f32 %v3296_v45, %v3263_v54  ;;  %v1376_v30 = vadd.f32 %v3306_v55, %v1354_v14 }
 0x32a   :  { %v1390_v42 = vmax.f32 %v1374_v40, 0.0  ;;  %v1502_v48 = vadd.f32 %v3314_v21, %v1480_v29  ;;  %v3415_v5 = vadd.f32 %v1501_v38, %v1388_v50  ;;  %v1553_v16 = vmul.f32 %v3397_v61, %v3397_v61 }
 0x32b   :  { %v1530_v15 = vadd.f32 %v1529_v59, %v3397_v61  ;;  %v1567_v33 = vadd.f32 %v1566_v34, %v1552_v53  ;;  %v1356_v52 = vmul.f32 %v3296_v45, %v3259_v22  ;;  %v1377_v57 = vadd.f32 %v3306_v55, %v1355_v28 }
 0x32c   :  { %v1391_v25 = vmax.f32 %v1375_v63, 0.0  ;;  %v1503_v54 = vadd.f32 %v3314_v21, %v1481_v32  ;;  %v3424_v27 = vadd.f32 %v1502_v48, %v1389_v60  ;;  %v1554_v3 = vmul.f32 %v3406_v11, %v3406_v11 }
 0x32d   :  { %v1531_v2 = vadd.f32 %v1530_v15, %v3406_v11  ;;  %v1568_v8 = vadd.f32 %v1567_v33, %v1553_v16  ;;  %v1357_v62 = vmul.f32 %v3296_v45, %v3277_v35  ;;  %v1378_v9 = vadd.f32 %v3306_v55, %v1356_v52 }
 0x32e   :  { %v1392_v4 = vmax.f32 %v1376_v30, 0.0  ;;  %v1504_v22 = vadd.f32 %v3314_v21, %v1482_v23  ;;  %v3433_v17 = vadd.f32 %v1503_v54, %v1390_v42  ;;  %v1555_v46 = vmul.f32 %v3415_v5, %v3415_v5 }
 0x32f   :  { %v1532_v29 = vadd.f32 %v1531_v2, %v3415_v5  ;;  %v1569_v51 = vadd.f32 %v1568_v8, %v1554_v3  ;;  %v1358_v13 = vmul.f32 %v3296_v45, %v3275_v24  ;;  %v1379_v31 = vadd.f32 %v3306_v55, %v1357_v62 }
 0x330   :  { %v1393_v20 = vmax.f32 %v1377_v57, 0.0  ;;  %v1505_v35 = vadd.f32 %v3314_v21, %v1483_v49  ;;  %v3442_v12 = vadd.f32 %v1504_v22, %v1391_v25  ;;  %v1556_v10 = vmul.f32 %v3424_v27, %v3424_v27 }
 0x331   :  { %v1533_v32 = vadd.f32 %v1532_v29, %v3424_v27  ;;  %v1570_v36 = vadd.f32 %v1569_v51, %v1555_v46  ;;  %v1380_v56 = vadd.f32 %v3306_v55, %v1358_v13  ;;  %v1394_v40 = vmax.f32 %v1378_v9, 0.0 }
 0x332   :  { %v1485_v50 = vmul.f32 %v3309_v43, %v3579_v58  ;;  %v1506_v24 = vadd.f32 %v3314_v21, %v3378_v39  ;;  %v3452_v45 = vadd.f32 %v1505_v35, %v1392_v4  ;;  %v1557_v18 = vmul.f32 %v3433_v17, %v3433_v17 }
 0x333   :  { %v1534_v23 = vadd.f32 %v1533_v32, %v3433_v17  ;;  %v1571_v59 = vadd.f32 %v1570_v36, %v1556_v10  ;;  %v1395_v7 = vmax.f32 %v1379_v31, 0.0  ;;  %v1486_v41 = vmul.f32 %v3309_v43, %v3580_v37 }
 0x334   :  { %v1507_v55 = vadd.f32 %v3314_v21, %v1485_v50  ;;  %v1522_v14 = vadd.f32 %v1506_v24, %v1393_v20  ;;  %v1558_v39 = vmul.f32 %v3442_v12, %v3442_v12  ;;  %v1487_v60 = vmul.f32 %v3309_v43, %v3121_v1  ;;  %v1588_v50 = vld [vmem:[%s3506_s11] sm:$0x1]  ;;  %s2004_s11 = smov [#allocation5]  }
 0x335   :  { %v1535_v49 = vadd.f32 %v1534_v23, %v3442_v12  ;;  %v1572_v63 = vadd.f32 %v1571_v59, %v1557_v18  ;;  %v1396_v38 = vmax.f32 %v1380_v56, 0.0  ;;  %v1508_v15 = vadd.f32 %v3314_v21, %v1486_v41  ;;  %v1592_v18 = vld [vmem:[%s3507_s12] sm:$0x1]  ;;  %s1676_s12 = sshll.u32 %s2004_s11, 4  ;;  %s1677_s12 = int_to_ptr.vmem [resolvable:$true] %s1676_s12 }
 0x336   :  { %v1523_v53 = vadd.f32 %v1507_v55, %v1394_v40  ;;  %v1559_v37 = vmul.f32 %v3452_v45, %v3452_v45  ;;  %v1509_v30 = vadd.f32 %v3314_v21, %v1487_v60  ;;  %v1560_v2 = vmul.f32 %v1522_v14, %v1522_v14  ;;  %s1975_s0 = scalar_lea.vmem %s1677_s12, 2048  ;;  %p1980_p6 = scmp.lt.s32.totalorder %s1677_s12, %s1677_s12 }
 0x337   :  { %v1536_v58 = vadd.f32 %v1535_v49, %v3452_v45  ;;  %v1573_v28 = vadd.f32 %v1572_v63, %v1558_v39  ;;  %v1524_v42 = vadd.f32 %v1508_v15, %v1395_v7  ;;  %p1976_p5 = scmp.ne.s32.totalorder %s1677_s12, %s1975_s0  ;;  %p1981_p7 = scmp.lt.s32.totalorder %s1975_s0, %s1975_s0 }
 0x338   :  { %v1525_v33 = vadd.f32 %v1509_v30, %v1396_v38  ;;  %v1561_v57 = vmul.f32 %v1523_v53, %v1523_v53 }
 0x339   :  { %v1537_v34 = vadd.f32 %v1536_v58, %v1522_v14  ;;  %v1574_v16 = vadd.f32 %v1573_v28, %v1559_v37  ;;  %v1562_v43 = vmul.f32 %v1524_v42, %v1524_v42  ;;  %p1982_p8 = por %p1981_p7, %p1980_p6 }
 0x33a   :  { %v1563_v3 = vmul.f32 %v1525_v33, %v1525_v33 }
 0x33b   :  { %v1538_v48 = vadd.f32 %v1537_v34, %v1523_v53  ;;  %v1575_v25 = vadd.f32 %v1574_v16, %v1560_v2  ;;  %p1983_p9 = pnand %p1982_p8, %p1976_p5 }
 0x33d   :  { %v1539_v52 = vadd.f32 %v1538_v48, %v1524_v42  ;;  %v1576_v54 = vadd.f32 %v1575_v25, %v1561_v57 }
 0x33f   :  { %v1540_v1 = vadd.f32 %v1539_v52, %v1525_v33  ;;  %v1577_v8 = vadd.f32 %v1576_v54, %v1562_v43 }
 0x341   :  { %v1541_v29 = vrot.slane %v1540_v1, 4  ;;  %v1578_v9 = vadd.f32 %v1577_v8, %v1563_v3 }
 0x343   :  { %v1542_v62 = vadd.f32 %v1541_v29, %v1540_v1  ;;  %v1579_v22 = vrot.slane %v1578_v9, 4 }
 0x345   :  { %v1543_v4 = vrot.slane %v1542_v62, 2  ;;  %v1580_v21 = vadd.f32 %v1579_v22, %v1578_v9 }
 0x347   :  { %v1544_v32 = vadd.f32 %v1543_v4, %v1542_v62  ;;  %v1581_v51 = vrot.slane %v1580_v21, 2 }
 0x349   :  { %v1545_v46 = vrot.slane %v1544_v32, 1  ;;  %v1582_v31 = vadd.f32 %v1581_v51, %v1580_v21 }
 0x34b   :  { %v1546_v13 = vadd.f32 %v1545_v46, %v1544_v32  ;;  %v1583_v35 = vrot.slane %v1582_v31, 1 }
 0x34d   :  { %v1547_v20 = vmul.f32 0.0078125, %v1546_v13  ;;  %v1584_v23 = vadd.f32 %v1583_v35, %v1582_v31 }
 0x34f   :  { %v1586_v10 = vmul.f32 %v1547_v20, %v1547_v20  ;;  %v1585_v36 = vmul.f32 0.0078125, %v1584_v23 }
 0x351   :  { %v1587_v56 = vsub.f32 %v1585_v36, %v1586_v10 }
 0x353   :  { %v1589_v40 = vadd.f32 1e-05, %v1587_v56 }
 0x355   :  { %1953 = vrsqrt.f32 %v1589_v40 }
 0x362   :  { %v1954_v24 = vpop.eup %1953 }
 0x363   :  { %v1591_v49 = vmul.f32 %v1954_v24, %v1588_v50 }
 0x365   :  { %v1593_v59 = vmul.f32 %v1591_v49, %v1547_v20  ;;  %v1599_v7 = vrot.slane %v1591_v49, %v2829_v6 }
 0x367   :  { %v1594_v41 = vsub.f32 %v1592_v18, %v1593_v59  ;;  %v1601_v55 = vmul.f32 %v1599_v7, %v3343_v44  ;;  %v1602_v58 = vmul.f32 %v1599_v7, %v3345_v19  ;;  %v1606_v39 = vmul.f32 %v1599_v7, %v3397_v61 }
 0x368   :  { %v1607_v63 = vmul.f32 %v1599_v7, %v3406_v11  ;;  %v1608_v60 = vmul.f32 %v1599_v7, %v3415_v5  ;;  %v1609_v38 = vmul.f32 %v1599_v7, %v3424_v27  ;;  %v1610_v15 = vmul.f32 %v1599_v7, %v3433_v17 }
 0x369   :  { %v1611_v34 = vmul.f32 %v1599_v7, %v3442_v12  ;;  %v1612_v37 = vmul.f32 %v1599_v7, %v3452_v45  ;;  %v1613_v28 = vmul.f32 %v1599_v7, %v1522_v14  ;;  %v1614_v30 = vmul.f32 %v1599_v7, %v1523_v53 }
 0x36a   :  { %v1615_v48 = vmul.f32 %v1599_v7, %v1524_v42  ;;  %v1603_v44 = vmul.f32 %v1599_v7, %v3363_v0  ;;  %v1604_v19 = vmul.f32 %v1599_v7, %v3381_v26  ;;  %v1616_v61 = vmul.f32 %v1599_v7, %v1525_v33 }
 0x36b   :  { %v1621_v11 = vrot.slane %v1594_v41, %v2829_v6  ;;  %v1605_v5 = vmul.f32 %v1599_v7, %v3388_v47 }
 0x36d   :  { %v1623_v2 = vadd.f32 %v1621_v11, %v1601_v55  ;;  %v1624_v27 = vadd.f32 %v1621_v11, %v1602_v58  ;;  %v1625_v16 = vadd.f32 %v1621_v11, %v1603_v44  ;;  %v1626_v17 = vadd.f32 %v1621_v11, %v1604_v19 }
 0x36e   :  { %v1627_v52 = vadd.f32 %v1621_v11, %v1605_v5  ;;  %v1628_v12 = vadd.f32 %v1621_v11, %v1606_v39  ;;  %v1629_v57 = vadd.f32 %v1621_v11, %v1607_v63  ;;  %v1630_v45 = vadd.f32 %v1621_v11, %v1608_v60 }
 0x36f   :  { %v1631_v14 = vadd.f32 %v1621_v11, %v1609_v38  ;;  %v1632_v53 = vadd.f32 %v1621_v11, %v1610_v15  ;;  %v1633_v42 = vadd.f32 %v1621_v11, %v1611_v34  ;;  %v1634_v25 = vadd.f32 %v1621_v11, %v1612_v37 }
 0x370   :  { %v1635_v0 = vadd.f32 %v1621_v11, %v1613_v28  ;;  %v1636_v1 = vadd.f32 %v1621_v11, %v1614_v30  ;;  %v1637_v26 = vadd.f32 %v1621_v11, %v1615_v48  ;;  %v1638_v33 = vadd.f32 %v1621_v11, %v1616_v61 }
 0x371   :  { %v1639_v43 = vmax.f32 %v1623_v2, 0.0  ;;  %v1640_v6 = vmax.f32 %v1624_v27, 0.0  ;;  %v1641_v54 = vmax.f32 %v1625_v16, 0.0  ;;  %v1642_v47 = vmax.f32 %v1626_v17, 0.0 }
 0x372   :  { %v1643_v29 = vmax.f32 %v1627_v52, 0.0  ;;  %v1644_v3 = vmax.f32 %v1628_v12, 0.0  ;;  %v1645_v8 = vmax.f32 %v1629_v57, 0.0  ;;  %v1646_v62 = vmax.f32 %v1630_v45, 0.0 }
 0x373   :  { %v1647_v9 = vmax.f32 %v1631_v14, 0.0  ;;  %v1648_v4 = vmax.f32 %v1632_v53, 0.0  ;;  %v1649_v22 = vmax.f32 %v1633_v42, 0.0  ;;  %v1650_v32 = vmax.f32 %v1634_v25, 0.0  ;;  %1655 = vst [vmem:[#allocation5] sm:$0xff] %v1639_v43  ;;  %1656 = vst [vmem:[#allocation5 + $0x8] sm:$0xff] %v1640_v6 }
 0x374   :  { %1657 = vst [vmem:[#allocation5 + $0x10] sm:$0xff] %v1641_v54  ;;  %1658 = vst [vmem:[#allocation5 + $0x18] sm:$0xff] %v1642_v47  ;;  %v1651_v21 = vmax.f32 %v1635_v0, 0.0  ;;  %v1652_v46 = vmax.f32 %v1636_v1, 0.0  ;;  %v1653_v51 = vmax.f32 %v1637_v26, 0.0  ;;  %v1654_v13 = vmax.f32 %v1638_v33, 0.0 }
 0x375   :  { %1659 = vst [vmem:[#allocation5 + $0x20] sm:$0xff] %v1643_v29  ;;  %1660 = vst [vmem:[#allocation5 + $0x28] sm:$0xff] %v1644_v3 }
 0x376   :  { %1661 = vst [vmem:[#allocation5 + $0x30] sm:$0xff] %v1645_v8  ;;  %1662 = vst [vmem:[#allocation5 + $0x38] sm:$0xff] %v1646_v62 }
 0x377   :  { %1663 = vst [vmem:[#allocation5 + $0x40] sm:$0xff] %v1647_v9  ;;  %1664 = vst [vmem:[#allocation5 + $0x48] sm:$0xff] %v1648_v4 }
 0x378   :  { %1665 = vst [vmem:[#allocation5 + $0x50] sm:$0xff] %v1649_v22  ;;  %1666 = vst [vmem:[#allocation5 + $0x58] sm:$0xff] %v1650_v32 }
 0x379   :  { %1667 = vst [vmem:[#allocation5 + $0x60] sm:$0xff] %v1651_v21  ;;  %1668 = vst [vmem:[#allocation5 + $0x68] sm:$0xff] %v1652_v46 }
 0x37a   :  { %1669 = vst [vmem:[#allocation5 + $0x70] sm:$0xff] %v1653_v51  ;;  %1670 = vst [vmem:[#allocation5 + $0x78] sm:$0xff] %v1654_v13 }
 0x37b   :  { %1986 = shalt.err (!%p1983_p9)
}
 0x37c   :  { %1682 = dma.vmem_to_hbm [thread:$0]  %s1677_s12, 2048, %s3508_s13, [#allocation4], %s2000_s28, %s2000_s28, %s2001_s29  }
 0x37d   :  { %1997 = dma.done.wait [#allocation4], 2048  }
 0x37e   :  { %1998 = vsyncadd [#allocation4], 4294965248 }
 0x37f   :  { %1686 = vsyncpa [#allocation3], 1 }
 0x380   :  { %1687 = vsyncpa [#allocation4], 1 }

</bundles_post_ra>
